<compile_context>
chip_gen: v5e
topology: v5e:2x2
jax: 0.10.0
libtpu: 0.0.40
codegen_flags: <defaults>
</compile_context>

<pallas_src>
import jax
import jax.numpy as jnp
import numpy as np
from jax.experimental import pallas as pl
from jax.experimental.pallas import tpu as pltpu


# ---------------------------------------------------------------------------
# Kernel
# ---------------------------------------------------------------------------
def _conv3x3_relu(buf, w_ref, b, layer, H):
    """3x3 stride-1 conv as 3 banded MXU matmuls on image b's padded slab.

    buf:   VMEM ref (B_TILE, H+2, W*C) f32; rows 0 and H+1 of each slab are the
           zero halo.
    w_ref: ref (L, 3, W*C, W*C) bf16 banded conv weights (W padding folded in).
    Returns (H, W*C) f32 with ReLU applied (accumulation in f32 on the MXU).
    """
    acc = jnp.dot(buf[b, 0:H, :].astype(jnp.bfloat16), w_ref[layer, 0],
                  preferred_element_type=jnp.float32)
    acc = acc + jnp.dot(buf[b, 1:H + 1, :].astype(jnp.bfloat16), w_ref[layer, 1],
                        preferred_element_type=jnp.float32)
    acc = acc + jnp.dot(buf[b, 2:H + 2, :].astype(jnp.bfloat16), w_ref[layer, 2],
                        preferred_element_type=jnp.float32)
    return jnp.maximum(acc, 0.0)


def fused_residuals_kernel(x_ref, w_ref, out_ref, xbuf, hbuf):
    # x_ref:   (B_TILE, H, W*C)  images, channels folded into the lane dim
    # w_ref:   (L, 3, W*C, W*C)  bf16 banded weights for all L = 2*num_repeat convs
    # out_ref: (B_TILE, H, W*C)
    # xbuf/hbuf: VMEM (B_TILE, H+2, W*C) f32 scratch (H-padded activations)
    B, H, WC = x_ref.shape
    num_repeat = w_ref.shape[0] // 2

    zrow = jnp.zeros((1, WC), jnp.float32)
    for b in range(B):
        # Zero ONLY the halo rows: interior rows are fully overwritten every
        # conv, so whole-buffer memsets would be pure wasted vst traffic.
        xbuf[b, 0:1, :] = zrow
        xbuf[b, H + 1:H + 2, :] = zrow
        hbuf[b, 0:1, :] = zrow
        hbuf[b, H + 1:H + 2, :] = zrow
        # Load this image's interior (f32 working precision in VMEM).
        xbuf[b, 1:H + 1, :] = x_ref[b].astype(jnp.float32)

    # Static unroll over residual blocks; activations stay resident in VMEM.
    for r in range(num_repeat):
        # conv1 + ReLU for every image in the tile: the B dot-chains are
        # independent, giving ILP that hides MXU drain latency.
        for b in range(B):
            hbuf[b, 1:H + 1, :] = _conv3x3_relu(xbuf, w_ref, b, 2 * r, H)
        # conv2 + ReLU, then the post-ReLU residual add (kept in f32).
        for b in range(B):
            xbuf[b, 1:H + 1, :] = (_conv3x3_relu(hbuf, w_ref, b, 2 * r + 1, H)
                                   + xbuf[b, 1:H + 1, :])

    for b in range(B):
        out_ref[b] = xbuf[b, 1:H + 1, :].astype(out_ref.dtype)


# ---------------------------------------------------------------------------
# Host-side weight preparation (hoisted off the per-call path)
# ---------------------------------------------------------------------------
def _band_weights_np(w_hwio, W):
    """(3, 3, Cin, Cout) HWIO kernel -> (3, W*C, W*C) banded matrices (numpy).

    band[dy][x_src*C + cin, x_out*C + cout] = w[dy, x_src - x_out + 1, cin, cout]
    (zero outside the band).  Width-direction zero padding is absorbed into the
    band structure, so the kernel only needs H padding.
    """
    w = np.asarray(w_hwio, dtype=np.float32)
    C = w.shape[-1]
    blocks = np.zeros((3, W, W, C, C), np.float32)  # [dy, x_src, x_out, ci, co]
    for dy in range(3):
        for dx in range(3):
            lo = max(0, 1 - dx)            # valid output columns for this dx
            hi = min(W, W - dx + 1)
            for xo in range(lo, hi):
                blocks[dy, xo + dx - 1, xo] = w[dy, dx]
    # -> [dy, x_src, cin, x_out, cout] -> (3, W*C, W*C)
    return blocks.transpose(0, 1, 3, 2, 4).reshape(3, W * C, W * C)


def build_banded_weights(params, W, dtype=jnp.bfloat16):
    """Stack all 2*num_repeat conv kernels into one (L, 3, W*C, W*C) bf16 array.

    Built once with numpy on the host: O(9*W*C^2) scatter work does not belong
    on the inference critical path.
    """
    mats = [_band_weights_np(w, W) for pair in params for w in pair]
    wb = np.stack(mats)                              # (L, 3, W*C, W*C) f32 host
    return jnp.asarray(wb, dtype=dtype)              # one-time transfer + cast


# ---------------------------------------------------------------------------
# Forward wrapper
# ---------------------------------------------------------------------------
def multiple_residuals_forward(x_nchw, wb, batch_tile=None):
    """x_nchw: (N, C, H, W) f32; wb: (L, 3, W*C, W*C) bf16 banded weights."""
    N, C, H, W = x_nchw.shape
    WC = W * C
    L = wb.shape[0]

    if batch_tile is None:
        # Interleave 2 images per grid step when possible (raises MXU
        # occupancy / ILP).  On a multi-TensorCore part with tiny N, prefer
        # batch_tile=1 so the "parallel" grid axis feeds both cores.
        batch_tile = 2 if (N % 2 == 0 and N >= 2) else 1
    assert N % batch_tile == 0, "batch must be divisible by batch_tile"

    # NCHW -> NHWC -> (N, H, W*C): channels live in the fast (lane) dimension.
    x = jnp.transpose(x_nchw, (0, 2, 3, 1)).reshape(N, H, WC)

    out = pl.pallas_call(
        fused_residuals_kernel,
        out_shape=jax.ShapeDtypeStruct((N, H, WC), x.dtype),
        grid=(N // batch_tile,),
        in_specs=[
            pl.BlockSpec((batch_tile, H, WC), lambda n: (n, 0, 0)),
            pl.BlockSpec((L, 3, WC, WC), lambda n: (0, 0, 0, 0)),
        ],
        out_specs=pl.BlockSpec((batch_tile, H, WC), lambda n: (n, 0, 0)),
        scratch_shapes=[
            pltpu.VMEM((batch_tile, H + 2, WC), jnp.float32),   # padded x
            pltpu.VMEM((batch_tile, H + 2, WC), jnp.float32),   # padded h
        ],
        compiler_params=pltpu.CompilerParams(
            dimension_semantics=("parallel",),
        ),
    )(x, wb)

    return jnp.transpose(out.reshape(N, H, W, C), (0, 3, 1, 2))  # back to NCHW


# ---------------------------------------------------------------------------
# Pure-JAX reference (f32 lax conv) for correctness checking
# ---------------------------------------------------------------------------
def _reference_forward(x_nchw, params):
    x = jnp.transpose(x_nchw, (0, 2, 3, 1))
    dn = ("NHWC", "HWIO", "NHWC")
    for (w1, w2) in params:
        h = jax.nn.relu(jax.lax.conv_general_dilated(
            x, w1, (1, 1), "SAME", dimension_numbers=dn))
        y = jax.nn.relu(jax.lax.conv_general_dilated(
            h, w2, (1, 1), "SAME", dimension_numbers=dn))
        x = y + x
    return jnp.transpose(x, (0, 3, 1, 2))


if __name__ == "__main__":
    # Small shapes consistent with the module; W * C == 128 -> lane-dense.
    N, C, H, W = 2, 8, 16, 16
    num_repeat = 2

    key = jax.random.PRNGKey(0)
    key, kx = jax.random.split(key)
    x = jax.random.normal(kx, (N, C, H, W), dtype=jnp.float32)

    # Synthetic conv weights stored directly in HWIO = (3, 3, Cin, Cout).
    params = []
    for _ in range(num_repeat):
        key, k1, k2 = jax.random.split(key, 3)
        w1 = jax.random.normal(k1, (3, 3, C, C), dtype=jnp.float32) * 0.1
        w2 = jax.random.normal(k2, (3, 3, C, C), dtype=jnp.float32) * 0.1
        params.append((w1, w2))

    # Hoisted, one-time banded-weight construction (host numpy), cast to bf16.
    wb = build_banded_weights(params, W)

    fwd = jax.jit(multiple_residuals_forward)
    out = jax.block_until_ready(fwd(x, wb))
    ref = jax.block_until_ready(_reference_forward(x, params))

    assert out.shape == (N, C, H, W)
    # bf16 MXU operands (f32 accumulation) vs f32 reference -> relaxed check.
    err = float(jnp.max(jnp.abs(out - ref)))
    scale = float(jnp.max(jnp.abs(ref))) + 1e-6
    assert err <= 3e-2 * scale, f"mismatch vs reference: rel err {err / scale:.3e}"

    print("KERNEL_OK")
</pallas_src>

<mosaic_0001>
module attributes {stable_mosaic.version = 11 : i64} {
  func.func @fused_residuals_kernel(%arg0: i32, %arg1: memref<2x16x128xf32, #tpu.memory_space<vmem>>, %arg2: memref<4x3x128x128xbf16, #tpu.memory_space<vmem>>, %arg3: memref<2x16x128xf32, #tpu.memory_space<vmem>>, %arg4: memref<2x18x128xf32, #tpu.memory_space<vmem>>, %arg5: memref<2x18x128xf32, #tpu.memory_space<vmem>>) attributes {dimension_semantics = [#tpu.dimension_semantics<parallel>], iteration_bounds = array<i64: 1>, scalar_prefetch = 0 : i64, scratch_operands = 2 : i64, tpu.core_type = #tpu.core_type<tc>, window_params = [{transform_indices = @transform_0, window_bounds = array<i64: 2, 16, 128>}, {pipeline_mode = #tpu.pipeline_mode<synchronous>, transform_indices = @transform_1, window_bounds = array<i64: 4, 3, 128, 128>}, {transform_indices = @transform_2, window_bounds = array<i64: 2, 16, 128>}]} {
    %cst = arith.constant 0.000000e+00 : f32
    %0 = vector.broadcast %cst : f32 to vector<1x128xf32>
    %c0 = arith.constant 0 : index
    %c0_0 = arith.constant 0 : index
    %c0_1 = arith.constant 0 : index
    %1 = vector.load %arg4[%c0, %c0_0, %c0_1] : memref<2x18x128xf32, #tpu.memory_space<vmem>>, vector<1x1x128xf32>
    %2 = vector.shape_cast %1 : vector<1x1x128xf32> to vector<1x128xf32>
    %3 = vector.shape_cast %0 : vector<1x128xf32> to vector<1x1x128xf32>
    tpu.vector_store %arg4[%c0, %c0_0, %c0_1], %3 {strides = array<i32>} : memref<2x18x128xf32, #tpu.memory_space<vmem>>, vector<1x1x128xf32>,
    %c0_2 = arith.constant 0 : index
    %c17 = arith.constant 17 : index
    %c0_3 = arith.constant 0 : index
    %4 = vector.load %arg4[%c0_2, %c17, %c0_3] : memref<2x18x128xf32, #tpu.memory_space<vmem>>, vector<1x1x128xf32>
    %5 = vector.shape_cast %4 : vector<1x1x128xf32> to vector<1x128xf32>
    %6 = vector.shape_cast %0 : vector<1x128xf32> to vector<1x1x128xf32>
    tpu.vector_store %arg4[%c0_2, %c17, %c0_3], %6 {strides = array<i32>} : memref<2x18x128xf32, #tpu.memory_space<vmem>>, vector<1x1x128xf32>,
    %c0_4 = arith.constant 0 : index
    %c0_5 = arith.constant 0 : index
    %c0_6 = arith.constant 0 : index
    %7 = vector.load %arg5[%c0_4, %c0_5, %c0_6] : memref<2x18x128xf32, #tpu.memory_space<vmem>>, vector<1x1x128xf32>
    %8 = vector.shape_cast %7 : vector<1x1x128xf32> to vector<1x128xf32>
    %9 = vector.shape_cast %0 : vector<1x128xf32> to vector<1x1x128xf32>
    tpu.vector_store %arg5[%c0_4, %c0_5, %c0_6], %9 {strides = array<i32>} : memref<2x18x128xf32, #tpu.memory_space<vmem>>, vector<1x1x128xf32>,
    %c0_7 = arith.constant 0 : index
    %c17_8 = arith.constant 17 : index
    %c0_9 = arith.constant 0 : index
    %10 = vector.load %arg5[%c0_7, %c17_8, %c0_9] : memref<2x18x128xf32, #tpu.memory_space<vmem>>, vector<1x1x128xf32>
    %11 = vector.shape_cast %10 : vector<1x1x128xf32> to vector<1x128xf32>
    %12 = vector.shape_cast %0 : vector<1x128xf32> to vector<1x1x128xf32>
    tpu.vector_store %arg5[%c0_7, %c17_8, %c0_9], %12 {strides = array<i32>} : memref<2x18x128xf32, #tpu.memory_space<vmem>>, vector<1x1x128xf32>,
    %c0_10 = arith.constant 0 : index
    %c0_11 = arith.constant 0 : index
    %c0_12 = arith.constant 0 : index
    %13 = vector.load %arg1[%c0_10, %c0_11, %c0_12] : memref<2x16x128xf32, #tpu.memory_space<vmem>>, vector<1x16x128xf32>
    %14 = vector.shape_cast %13 : vector<1x16x128xf32> to vector<16x128xf32>
    %c0_13 = arith.constant 0 : index
    %c1 = arith.constant 1 : index
    %c0_14 = arith.constant 0 : index
    %15 = vector.load %arg4[%c0_13, %c1, %c0_14] : memref<2x18x128xf32, #tpu.memory_space<vmem>>, vector<1x16x128xf32>
    %16 = vector.shape_cast %15 : vector<1x16x128xf32> to vector<16x128xf32>
    %17 = vector.shape_cast %14 : vector<16x128xf32> to vector<1x16x128xf32>
    tpu.vector_store %arg4[%c0_13, %c1, %c0_14], %17 {strides = array<i32>} : memref<2x18x128xf32, #tpu.memory_space<vmem>>, vector<1x16x128xf32>,
    %c1_15 = arith.constant 1 : index
    %c0_16 = arith.constant 0 : index
    %c0_17 = arith.constant 0 : index
    %18 = vector.load %arg4[%c1_15, %c0_16, %c0_17] : memref<2x18x128xf32, #tpu.memory_space<vmem>>, vector<1x1x128xf32>
    %19 = vector.shape_cast %18 : vector<1x1x128xf32> to vector<1x128xf32>
    %20 = vector.shape_cast %0 : vector<1x128xf32> to vector<1x1x128xf32>
    tpu.vector_store %arg4[%c1_15, %c0_16, %c0_17], %20 {strides = array<i32>} : memref<2x18x128xf32, #tpu.memory_space<vmem>>, vector<1x1x128xf32>,
    %c1_18 = arith.constant 1 : index
    %c17_19 = arith.constant 17 : index
    %c0_20 = arith.constant 0 : index
    %21 = vector.load %arg4[%c1_18, %c17_19, %c0_20] : memref<2x18x128xf32, #tpu.memory_space<vmem>>, vector<1x1x128xf32>
    %22 = vector.shape_cast %21 : vector<1x1x128xf32> to vector<1x128xf32>
    %23 = vector.shape_cast %0 : vector<1x128xf32> to vector<1x1x128xf32>
    tpu.vector_store %arg4[%c1_18, %c17_19, %c0_20], %23 {strides = array<i32>} : memref<2x18x128xf32, #tpu.memory_space<vmem>>, vector<1x1x128xf32>,
    %c1_21 = arith.constant 1 : index
    %c0_22 = arith.constant 0 : index
    %c0_23 = arith.constant 0 : index
    %24 = vector.load %arg5[%c1_21, %c0_22, %c0_23] : memref<2x18x128xf32, #tpu.memory_space<vmem>>, vector<1x1x128xf32>
    %25 = vector.shape_cast %24 : vector<1x1x128xf32> to vector<1x128xf32>
    %26 = vector.shape_cast %0 : vector<1x128xf32> to vector<1x1x128xf32>
    tpu.vector_store %arg5[%c1_21, %c0_22, %c0_23], %26 {strides = array<i32>} : memref<2x18x128xf32, #tpu.memory_space<vmem>>, vector<1x1x128xf32>,
    %c1_24 = arith.constant 1 : index
    %c17_25 = arith.constant 17 : index
    %c0_26 = arith.constant 0 : index
    %27 = vector.load %arg5[%c1_24, %c17_25, %c0_26] : memref<2x18x128xf32, #tpu.memory_space<vmem>>, vector<1x1x128xf32>
    %28 = vector.shape_cast %27 : vector<1x1x128xf32> to vector<1x128xf32>
    %29 = vector.shape_cast %0 : vector<1x128xf32> to vector<1x1x128xf32>
    tpu.vector_store %arg5[%c1_24, %c17_25, %c0_26], %29 {strides = array<i32>} : memref<2x18x128xf32, #tpu.memory_space<vmem>>, vector<1x1x128xf32>,
    %c1_27 = arith.constant 1 : index
    %c0_28 = arith.constant 0 : index
    %c0_29 = arith.constant 0 : index
    %30 = vector.load %arg1[%c1_27, %c0_28, %c0_29] : memref<2x16x128xf32, #tpu.memory_space<vmem>>, vector<1x16x128xf32>
    %31 = vector.shape_cast %30 : vector<1x16x128xf32> to vector<16x128xf32>
    %c1_30 = arith.constant 1 : index
    %c1_31 = arith.constant 1 : index
    %c0_32 = arith.constant 0 : index
    %32 = vector.load %arg4[%c1_30, %c1_31, %c0_32] : memref<2x18x128xf32, #tpu.memory_space<vmem>>, vector<1x16x128xf32>
    %33 = vector.shape_cast %32 : vector<1x16x128xf32> to vector<16x128xf32>
    %34 = vector.shape_cast %31 : vector<16x128xf32> to vector<1x16x128xf32>
    tpu.vector_store %arg4[%c1_30, %c1_31, %c0_32], %34 {strides = array<i32>} : memref<2x18x128xf32, #tpu.memory_space<vmem>>, vector<1x16x128xf32>,
    %c0_33 = arith.constant 0 : index
    %c0_34 = arith.constant 0 : index
    %c0_35 = arith.constant 0 : index
    %35 = vector.load %arg4[%c0_33, %c0_34, %c0_35] : memref<2x18x128xf32, #tpu.memory_space<vmem>>, vector<1x16x128xf32>
    %36 = vector.shape_cast %35 : vector<1x16x128xf32> to vector<16x128xf32>
    %37 = arith.truncf %36 : vector<16x128xf32> to vector<16x128xbf16>
    %c0_36 = arith.constant 0 : index
    %c0_37 = arith.constant 0 : index
    %c0_38 = arith.constant 0 : index
    %c0_39 = arith.constant 0 : index
    %38 = vector.load %arg2[%c0_36, %c0_37, %c0_38, %c0_39] : memref<4x3x128x128xbf16, #tpu.memory_space<vmem>>, vector<1x1x128x128xbf16>
    %39 = vector.shape_cast %38 : vector<1x1x128x128xbf16> to vector<128x128xbf16>
    %cst_40 = arith.constant dense<0.000000e+00> : vector<16x128xf32>
    %40 = tpu.matmul %37, %39, %cst_40 {dimension_numbers = #tpu.dot_dimension_numbers<[1], [0], [0], [1], [0, 0, 1, 1], [], []>} : vector<16x128xbf16>, vector<128x128xbf16>, vector<16x128xf32> -> vector<16x128xf32>
    %c0_41 = arith.constant 0 : index
    %c1_42 = arith.constant 1 : index
    %c0_43 = arith.constant 0 : index
    %41 = vector.load %arg4[%c0_41, %c1_42, %c0_43] : memref<2x18x128xf32, #tpu.memory_space<vmem>>, vector<1x16x128xf32>
    %42 = vector.shape_cast %41 : vector<1x16x128xf32> to vector<16x128xf32>
    %43 = arith.truncf %42 : vector<16x128xf32> to vector<16x128xbf16>
    %c0_44 = arith.constant 0 : index
    %c1_45 = arith.constant 1 : index
    %c0_46 = arith.constant 0 : index
    %c0_47 = arith.constant 0 : index
    %44 = vector.load %arg2[%c0_44, %c1_45, %c0_46, %c0_47] : memref<4x3x128x128xbf16, #tpu.memory_space<vmem>>, vector<1x1x128x128xbf16>
    %45 = vector.shape_cast %44 : vector<1x1x128x128xbf16> to vector<128x128xbf16>
    %cst_48 = arith.constant dense<0.000000e+00> : vector<16x128xf32>
    %46 = tpu.matmul %43, %45, %cst_48 {dimension_numbers = #tpu.dot_dimension_numbers<[1], [0], [0], [1], [0, 0, 1, 1], [], []>} : vector<16x128xbf16>, vector<128x128xbf16>, vector<16x128xf32> -> vector<16x128xf32>
    %47 = arith.addf %40, %46 : vector<16x128xf32>
    %c0_49 = arith.constant 0 : index
    %c2 = arith.constant 2 : index
    %c0_50 = arith.constant 0 : index
    %48 = vector.load %arg4[%c0_49, %c2, %c0_50] : memref<2x18x128xf32, #tpu.memory_space<vmem>>, vector<1x16x128xf32>
    %49 = vector.shape_cast %48 : vector<1x16x128xf32> to vector<16x128xf32>
    %50 = arith.truncf %49 : vector<16x128xf32> to vector<16x128xbf16>
    %c0_51 = arith.constant 0 : index
    %c2_52 = arith.constant 2 : index
    %c0_53 = arith.constant 0 : index
    %c0_54 = arith.constant 0 : index
    %51 = vector.load %arg2[%c0_51, %c2_52, %c0_53, %c0_54] : memref<4x3x128x128xbf16, #tpu.memory_space<vmem>>, vector<1x1x128x128xbf16>
    %52 = vector.shape_cast %51 : vector<1x1x128x128xbf16> to vector<128x128xbf16>
    %cst_55 = arith.constant dense<0.000000e+00> : vector<16x128xf32>
    %53 = tpu.matmul %50, %52, %cst_55 {dimension_numbers = #tpu.dot_dimension_numbers<[1], [0], [0], [1], [0, 0, 1, 1], [], []>} : vector<16x128xbf16>, vector<128x128xbf16>, vector<16x128xf32> -> vector<16x128xf32>
    %54 = arith.addf %47, %53 : vector<16x128xf32>
    %cst_56 = arith.constant 0.000000e+00 : f32
    %55 = vector.broadcast %cst_56 : f32 to vector<16x128xf32>
    %56 = arith.maximumf %54, %55 : vector<16x128xf32>
    %c0_57 = arith.constant 0 : index
    %c1_58 = arith.constant 1 : index
    %c0_59 = arith.constant 0 : index
    %57 = vector.load %arg5[%c0_57, %c1_58, %c0_59] : memref<2x18x128xf32, #tpu.memory_space<vmem>>, vector<1x16x128xf32>
    %58 = vector.shape_cast %57 : vector<1x16x128xf32> to vector<16x128xf32>
    %59 = vector.shape_cast %56 : vector<16x128xf32> to vector<1x16x128xf32>
    tpu.vector_store %arg5[%c0_57, %c1_58, %c0_59], %59 {strides = array<i32>} : memref<2x18x128xf32, #tpu.memory_space<vmem>>, vector<1x16x128xf32>,
    %c1_60 = arith.constant 1 : index
    %c0_61 = arith.constant 0 : index
    %c0_62 = arith.constant 0 : index
    %60 = vector.load %arg4[%c1_60, %c0_61, %c0_62] : memref<2x18x128xf32, #tpu.memory_space<vmem>>, vector<1x16x128xf32>
    %61 = vector.shape_cast %60 : vector<1x16x128xf32> to vector<16x128xf32>
    %62 = arith.truncf %61 : vector<16x128xf32> to vector<16x128xbf16>
    %c0_63 = arith.constant 0 : index
    %c0_64 = arith.constant 0 : index
    %c0_65 = arith.constant 0 : index
    %c0_66 = arith.constant 0 : index
    %63 = vector.load %arg2[%c0_63, %c0_64, %c0_65, %c0_66] : memref<4x3x128x128xbf16, #tpu.memory_space<vmem>>, vector<1x1x128x128xbf16>
    %64 = vector.shape_cast %63 : vector<1x1x128x128xbf16> to vector<128x128xbf16>
    %cst_67 = arith.constant dense<0.000000e+00> : vector<16x128xf32>
    %65 = tpu.matmul %62, %64, %cst_67 {dimension_numbers = #tpu.dot_dimension_numbers<[1], [0], [0], [1], [0, 0, 1, 1], [], []>} : vector<16x128xbf16>, vector<128x128xbf16>, vector<16x128xf32> -> vector<16x128xf32>
    %c1_68 = arith.constant 1 : index
    %c1_69 = arith.constant 1 : index
    %c0_70 = arith.constant 0 : index
    %66 = vector.load %arg4[%c1_68, %c1_69, %c0_70] : memref<2x18x128xf32, #tpu.memory_space<vmem>>, vector<1x16x128xf32>
    %67 = vector.shape_cast %66 : vector<1x16x128xf32> to vector<16x128xf32>
    %68 = arith.truncf %67 : vector<16x128xf32> to vector<16x128xbf16>
    %c0_71 = arith.constant 0 : index
    %c1_72 = arith.constant 1 : index
    %c0_73 = arith.constant 0 : index
    %c0_74 = arith.constant 0 : index
    %69 = vector.load %arg2[%c0_71, %c1_72, %c0_73, %c0_74] : memref<4x3x128x128xbf16, #tpu.memory_space<vmem>>, vector<1x1x128x128xbf16>
    %70 = vector.shape_cast %69 : vector<1x1x128x128xbf16> to vector<128x128xbf16>
    %cst_75 = arith.constant dense<0.000000e+00> : vector<16x128xf32>
    %71 = tpu.matmul %68, %70, %cst_75 {dimension_numbers = #tpu.dot_dimension_numbers<[1], [0], [0], [1], [0, 0, 1, 1], [], []>} : vector<16x128xbf16>, vector<128x128xbf16>, vector<16x128xf32> -> vector<16x128xf32>
    %72 = arith.addf %65, %71 : vector<16x128xf32>
    %c1_76 = arith.constant 1 : index
    %c2_77 = arith.constant 2 : index
    %c0_78 = arith.constant 0 : index
    %73 = vector.load %arg4[%c1_76, %c2_77, %c0_78] : memref<2x18x128xf32, #tpu.memory_space<vmem>>, vector<1x16x128xf32>
    %74 = vector.shape_cast %73 : vector<1x16x128xf32> to vector<16x128xf32>
    %75 = arith.truncf %74 : vector<16x128xf32> to vector<16x128xbf16>
    %c0_79 = arith.constant 0 : index
    %c2_80 = arith.constant 2 : index
    %c0_81 = arith.constant 0 : index
    %c0_82 = arith.constant 0 : index
    %76 = vector.load %arg2[%c0_79, %c2_80, %c0_81, %c0_82] : memref<4x3x128x128xbf16, #tpu.memory_space<vmem>>, vector<1x1x128x128xbf16>
    %77 = vector.shape_cast %76 : vector<1x1x128x128xbf16> to vector<128x128xbf16>
    %cst_83 = arith.constant dense<0.000000e+00> : vector<16x128xf32>
    %78 = tpu.matmul %75, %77, %cst_83 {dimension_numbers = #tpu.dot_dimension_numbers<[1], [0], [0], [1], [0, 0, 1, 1], [], []>} : vector<16x128xbf16>, vector<128x128xbf16>, vector<16x128xf32> -> vector<16x128xf32>
    %79 = arith.addf %72, %78 : vector<16x128xf32>
    %cst_84 = arith.constant 0.000000e+00 : f32
    %80 = vector.broadcast %cst_84 : f32 to vector<16x128xf32>
    %81 = arith.maximumf %79, %80 : vector<16x128xf32>
    %c1_85 = arith.constant 1 : index
    %c1_86 = arith.constant 1 : index
    %c0_87 = arith.constant 0 : index
    %82 = vector.load %arg5[%c1_85, %c1_86, %c0_87] : memref<2x18x128xf32, #tpu.memory_space<vmem>>, vector<1x16x128xf32>
    %83 = vector.shape_cast %82 : vector<1x16x128xf32> to vector<16x128xf32>
    %84 = vector.shape_cast %81 : vector<16x128xf32> to vector<1x16x128xf32>
    tpu.vector_store %arg5[%c1_85, %c1_86, %c0_87], %84 {strides = array<i32>} : memref<2x18x128xf32, #tpu.memory_space<vmem>>, vector<1x16x128xf32>,
    %c0_88 = arith.constant 0 : index
    %c0_89 = arith.constant 0 : index
    %c0_90 = arith.constant 0 : index
    %85 = vector.load %arg5[%c0_88, %c0_89, %c0_90] : memref<2x18x128xf32, #tpu.memory_space<vmem>>, vector<1x16x128xf32>
    %86 = vector.shape_cast %85 : vector<1x16x128xf32> to vector<16x128xf32>
    %87 = arith.truncf %86 : vector<16x128xf32> to vector<16x128xbf16>
    %c1_91 = arith.constant 1 : index
    %c0_92 = arith.constant 0 : index
    %c0_93 = arith.constant 0 : index
    %c0_94 = arith.constant 0 : index
    %88 = vector.load %arg2[%c1_91, %c0_92, %c0_93, %c0_94] : memref<4x3x128x128xbf16, #tpu.memory_space<vmem>>, vector<1x1x128x128xbf16>
    %89 = vector.shape_cast %88 : vector<1x1x128x128xbf16> to vector<128x128xbf16>
    %cst_95 = arith.constant dense<0.000000e+00> : vector<16x128xf32>
    %90 = tpu.matmul %87, %89, %cst_95 {dimension_numbers = #tpu.dot_dimension_numbers<[1], [0], [0], [1], [0, 0, 1, 1], [], []>} : vector<16x128xbf16>, vector<128x128xbf16>, vector<16x128xf32> -> vector<16x128xf32>
    %c0_96 = arith.constant 0 : index
    %c1_97 = arith.constant 1 : index
    %c0_98 = arith.constant 0 : index
    %91 = vector.load %arg5[%c0_96, %c1_97, %c0_98] : memref<2x18x128xf32, #tpu.memory_space<vmem>>, vector<1x16x128xf32>
    %92 = vector.shape_cast %91 : vector<1x16x128xf32> to vector<16x128xf32>
    %93 = arith.truncf %92 : vector<16x128xf32> to vector<16x128xbf16>
    %c1_99 = arith.constant 1 : index
    %c1_100 = arith.constant 1 : index
    %c0_101 = arith.constant 0 : index
    %c0_102 = arith.constant 0 : index
    %94 = vector.load %arg2[%c1_99, %c1_100, %c0_101, %c0_102] : memref<4x3x128x128xbf16, #tpu.memory_space<vmem>>, vector<1x1x128x128xbf16>
    %95 = vector.shape_cast %94 : vector<1x1x128x128xbf16> to vector<128x128xbf16>
    %cst_103 = arith.constant dense<0.000000e+00> : vector<16x128xf32>
    %96 = tpu.matmul %93, %95, %cst_103 {dimension_numbers = #tpu.dot_dimension_numbers<[1], [0], [0], [1], [0, 0, 1, 1], [], []>} : vector<16x128xbf16>, vector<128x128xbf16>, vector<16x128xf32> -> vector<16x128xf32>
    %97 = arith.addf %90, %96 : vector<16x128xf32>
    %c0_104 = arith.constant 0 : index
    %c2_105 = arith.constant 2 : index
    %c0_106 = arith.constant 0 : index
    %98 = vector.load %arg5[%c0_104, %c2_105, %c0_106] : memref<2x18x128xf32, #tpu.memory_space<vmem>>, vector<1x16x128xf32>
    %99 = vector.shape_cast %98 : vector<1x16x128xf32> to vector<16x128xf32>
    %100 = arith.truncf %99 : vector<16x128xf32> to vector<16x128xbf16>
    %c1_107 = arith.constant 1 : index
    %c2_108 = arith.constant 2 : index
    %c0_109 = arith.constant 0 : index
    %c0_110 = arith.constant 0 : index
    %101 = vector.load %arg2[%c1_107, %c2_108, %c0_109, %c0_110] : memref<4x3x128x128xbf16, #tpu.memory_space<vmem>>, vector<1x1x128x128xbf16>
    %102 = vector.shape_cast %101 : vector<1x1x128x128xbf16> to vector<128x128xbf16>
    %cst_111 = arith.constant dense<0.000000e+00> : vector<16x128xf32>
    %103 = tpu.matmul %100, %102, %cst_111 {dimension_numbers = #tpu.dot_dimension_numbers<[1], [0], [0], [1], [0, 0, 1, 1], [], []>} : vector<16x128xbf16>, vector<128x128xbf16>, vector<16x128xf32> -> vector<16x128xf32>
    %104 = arith.addf %97, %103 : vector<16x128xf32>
    %cst_112 = arith.constant 0.000000e+00 : f32
    %105 = vector.broadcast %cst_112 : f32 to vector<16x128xf32>
    %106 = arith.maximumf %104, %105 : vector<16x128xf32>
    %c0_113 = arith.constant 0 : index
    %c1_114 = arith.constant 1 : index
    %c0_115 = arith.constant 0 : index
    %107 = vector.load %arg4[%c0_113, %c1_114, %c0_115] : memref<2x18x128xf32, #tpu.memory_space<vmem>>, vector<1x16x128xf32>
    %108 = vector.shape_cast %107 : vector<1x16x128xf32> to vector<16x128xf32>
    %109 = arith.addf %106, %108 : vector<16x128xf32>
    %c0_116 = arith.constant 0 : index
    %c1_117 = arith.constant 1 : index
    %c0_118 = arith.constant 0 : index
    %110 = vector.load %arg4[%c0_116, %c1_117, %c0_118] : memref<2x18x128xf32, #tpu.memory_space<vmem>>, vector<1x16x128xf32>
    %111 = vector.shape_cast %110 : vector<1x16x128xf32> to vector<16x128xf32>
    %112 = vector.shape_cast %109 : vector<16x128xf32> to vector<1x16x128xf32>
    tpu.vector_store %arg4[%c0_116, %c1_117, %c0_118], %112 {strides = array<i32>} : memref<2x18x128xf32, #tpu.memory_space<vmem>>, vector<1x16x128xf32>,
    %c1_119 = arith.constant 1 : index
    %c0_120 = arith.constant 0 : index
    %c0_121 = arith.constant 0 : index
    %113 = vector.load %arg5[%c1_119, %c0_120, %c0_121] : memref<2x18x128xf32, #tpu.memory_space<vmem>>, vector<1x16x128xf32>
    %114 = vector.shape_cast %113 : vector<1x16x128xf32> to vector<16x128xf32>
    %115 = arith.truncf %114 : vector<16x128xf32> to vector<16x128xbf16>
    %c1_122 = arith.constant 1 : index
    %c0_123 = arith.constant 0 : index
    %c0_124 = arith.constant 0 : index
    %c0_125 = arith.constant 0 : index
    %116 = vector.load %arg2[%c1_122, %c0_123, %c0_124, %c0_125] : memref<4x3x128x128xbf16, #tpu.memory_space<vmem>>, vector<1x1x128x128xbf16>
    %117 = vector.shape_cast %116 : vector<1x1x128x128xbf16> to vector<128x128xbf16>
    %cst_126 = arith.constant dense<0.000000e+00> : vector<16x128xf32>
    %118 = tpu.matmul %115, %117, %cst_126 {dimension_numbers = #tpu.dot_dimension_numbers<[1], [0], [0], [1], [0, 0, 1, 1], [], []>} : vector<16x128xbf16>, vector<128x128xbf16>, vector<16x128xf32> -> vector<16x128xf32>
    %c1_127 = arith.constant 1 : index
    %c1_128 = arith.constant 1 : index
    %c0_129 = arith.constant 0 : index
    %119 = vector.load %arg5[%c1_127, %c1_128, %c0_129] : memref<2x18x128xf32, #tpu.memory_space<vmem>>, vector<1x16x128xf32>
    %120 = vector.shape_cast %119 : vector<1x16x128xf32> to vector<16x128xf32>
    %121 = arith.truncf %120 : vector<16x128xf32> to vector<16x128xbf16>
    %c1_130 = arith.constant 1 : index
    %c1_131 = arith.constant 1 : index
    %c0_132 = arith.constant 0 : index
    %c0_133 = arith.constant 0 : index
    %122 = vector.load %arg2[%c1_130, %c1_131, %c0_132, %c0_133] : memref<4x3x128x128xbf16, #tpu.memory_space<vmem>>, vector<1x1x128x128xbf16>
    %123 = vector.shape_cast %122 : vector<1x1x128x128xbf16> to vector<128x128xbf16>
    %cst_134 = arith.constant dense<0.000000e+00> : vector<16x128xf32>
    %124 = tpu.matmul %121, %123, %cst_134 {dimension_numbers = #tpu.dot_dimension_numbers<[1], [0], [0], [1], [0, 0, 1, 1], [], []>} : vector<16x128xbf16>, vector<128x128xbf16>, vector<16x128xf32> -> vector<16x128xf32>
    %125 = arith.addf %118, %124 : vector<16x128xf32>
    %c1_135 = arith.constant 1 : index
    %c2_136 = arith.constant 2 : index
    %c0_137 = arith.constant 0 : index
    %126 = vector.load %arg5[%c1_135, %c2_136, %c0_137] : memref<2x18x128xf32, #tpu.memory_space<vmem>>, vector<1x16x128xf32>
    %127 = vector.shape_cast %126 : vector<1x16x128xf32> to vector<16x128xf32>
    %128 = arith.truncf %127 : vector<16x128xf32> to vector<16x128xbf16>
    %c1_138 = arith.constant 1 : index
    %c2_139 = arith.constant 2 : index
    %c0_140 = arith.constant 0 : index
    %c0_141 = arith.constant 0 : index
    %129 = vector.load %arg2[%c1_138, %c2_139, %c0_140, %c0_141] : memref<4x3x128x128xbf16, #tpu.memory_space<vmem>>, vector<1x1x128x128xbf16>
    %130 = vector.shape_cast %129 : vector<1x1x128x128xbf16> to vector<128x128xbf16>
    %cst_142 = arith.constant dense<0.000000e+00> : vector<16x128xf32>
    %131 = tpu.matmul %128, %130, %cst_142 {dimension_numbers = #tpu.dot_dimension_numbers<[1], [0], [0], [1], [0, 0, 1, 1], [], []>} : vector<16x128xbf16>, vector<128x128xbf16>, vector<16x128xf32> -> vector<16x128xf32>
    %132 = arith.addf %125, %131 : vector<16x128xf32>
    %cst_143 = arith.constant 0.000000e+00 : f32
    %133 = vector.broadcast %cst_143 : f32 to vector<16x128xf32>
    %134 = arith.maximumf %132, %133 : vector<16x128xf32>
    %c1_144 = arith.constant 1 : index
    %c1_145 = arith.constant 1 : index
    %c0_146 = arith.constant 0 : index
    %135 = vector.load %arg4[%c1_144, %c1_145, %c0_146] : memref<2x18x128xf32, #tpu.memory_space<vmem>>, vector<1x16x128xf32>
    %136 = vector.shape_cast %135 : vector<1x16x128xf32> to vector<16x128xf32>
    %137 = arith.addf %134, %136 : vector<16x128xf32>
    %c1_147 = arith.constant 1 : index
    %c1_148 = arith.constant 1 : index
    %c0_149 = arith.constant 0 : index
    %138 = vector.load %arg4[%c1_147, %c1_148, %c0_149] : memref<2x18x128xf32, #tpu.memory_space<vmem>>, vector<1x16x128xf32>
    %139 = vector.shape_cast %138 : vector<1x16x128xf32> to vector<16x128xf32>
    %140 = vector.shape_cast %137 : vector<16x128xf32> to vector<1x16x128xf32>
    tpu.vector_store %arg4[%c1_147, %c1_148, %c0_149], %140 {strides = array<i32>} : memref<2x18x128xf32, #tpu.memory_space<vmem>>, vector<1x16x128xf32>,
    %c0_150 = arith.constant 0 : index
    %c0_151 = arith.constant 0 : index
    %c0_152 = arith.constant 0 : index
    %141 = vector.load %arg4[%c0_150, %c0_151, %c0_152] : memref<2x18x128xf32, #tpu.memory_space<vmem>>, vector<1x16x128xf32>
    %142 = vector.shape_cast %141 : vector<1x16x128xf32> to vector<16x128xf32>
    %143 = arith.truncf %142 : vector<16x128xf32> to vector<16x128xbf16>
    %c2_153 = arith.constant 2 : index
    %c0_154 = arith.constant 0 : index
    %c0_155 = arith.constant 0 : index
    %c0_156 = arith.constant 0 : index
    %144 = vector.load %arg2[%c2_153, %c0_154, %c0_155, %c0_156] : memref<4x3x128x128xbf16, #tpu.memory_space<vmem>>, vector<1x1x128x128xbf16>
    %145 = vector.shape_cast %144 : vector<1x1x128x128xbf16> to vector<128x128xbf16>
    %cst_157 = arith.constant dense<0.000000e+00> : vector<16x128xf32>
    %146 = tpu.matmul %143, %145, %cst_157 {dimension_numbers = #tpu.dot_dimension_numbers<[1], [0], [0], [1], [0, 0, 1, 1], [], []>} : vector<16x128xbf16>, vector<128x128xbf16>, vector<16x128xf32> -> vector<16x128xf32>
    %c0_158 = arith.constant 0 : index
    %c1_159 = arith.constant 1 : index
    %c0_160 = arith.constant 0 : index
    %147 = vector.load %arg4[%c0_158, %c1_159, %c0_160] : memref<2x18x128xf32, #tpu.memory_space<vmem>>, vector<1x16x128xf32>
    %148 = vector.shape_cast %147 : vector<1x16x128xf32> to vector<16x128xf32>
    %149 = arith.truncf %148 : vector<16x128xf32> to vector<16x128xbf16>
    %c2_161 = arith.constant 2 : index
    %c1_162 = arith.constant 1 : index
    %c0_163 = arith.constant 0 : index
    %c0_164 = arith.constant 0 : index
    %150 = vector.load %arg2[%c2_161, %c1_162, %c0_163, %c0_164] : memref<4x3x128x128xbf16, #tpu.memory_space<vmem>>, vector<1x1x128x128xbf16>
    %151 = vector.shape_cast %150 : vector<1x1x128x128xbf16> to vector<128x128xbf16>
    %cst_165 = arith.constant dense<0.000000e+00> : vector<16x128xf32>
    %152 = tpu.matmul %149, %151, %cst_165 {dimension_numbers = #tpu.dot_dimension_numbers<[1], [0], [0], [1], [0, 0, 1, 1], [], []>} : vector<16x128xbf16>, vector<128x128xbf16>, vector<16x128xf32> -> vector<16x128xf32>
    %153 = arith.addf %146, %152 : vector<16x128xf32>
    %c0_166 = arith.constant 0 : index
    %c2_167 = arith.constant 2 : index
    %c0_168 = arith.constant 0 : index
    %154 = vector.load %arg4[%c0_166, %c2_167, %c0_168] : memref<2x18x128xf32, #tpu.memory_space<vmem>>, vector<1x16x128xf32>
    %155 = vector.shape_cast %154 : vector<1x16x128xf32> to vector<16x128xf32>
    %156 = arith.truncf %155 : vector<16x128xf32> to vector<16x128xbf16>
    %c2_169 = arith.constant 2 : index
    %c2_170 = arith.constant 2 : index
    %c0_171 = arith.constant 0 : index
    %c0_172 = arith.constant 0 : index
    %157 = vector.load %arg2[%c2_169, %c2_170, %c0_171, %c0_172] : memref<4x3x128x128xbf16, #tpu.memory_space<vmem>>, vector<1x1x128x128xbf16>
    %158 = vector.shape_cast %157 : vector<1x1x128x128xbf16> to vector<128x128xbf16>
    %cst_173 = arith.constant dense<0.000000e+00> : vector<16x128xf32>
    %159 = tpu.matmul %156, %158, %cst_173 {dimension_numbers = #tpu.dot_dimension_numbers<[1], [0], [0], [1], [0, 0, 1, 1], [], []>} : vector<16x128xbf16>, vector<128x128xbf16>, vector<16x128xf32> -> vector<16x128xf32>
    %160 = arith.addf %153, %159 : vector<16x128xf32>
    %cst_174 = arith.constant 0.000000e+00 : f32
    %161 = vector.broadcast %cst_174 : f32 to vector<16x128xf32>
    %162 = arith.maximumf %160, %161 : vector<16x128xf32>
    %c0_175 = arith.constant 0 : index
    %c1_176 = arith.constant 1 : index
    %c0_177 = arith.constant 0 : index
    %163 = vector.load %arg5[%c0_175, %c1_176, %c0_177] : memref<2x18x128xf32, #tpu.memory_space<vmem>>, vector<1x16x128xf32>
    %164 = vector.shape_cast %163 : vector<1x16x128xf32> to vector<16x128xf32>
    %165 = vector.shape_cast %162 : vector<16x128xf32> to vector<1x16x128xf32>
    tpu.vector_store %arg5[%c0_175, %c1_176, %c0_177], %165 {strides = array<i32>} : memref<2x18x128xf32, #tpu.memory_space<vmem>>, vector<1x16x128xf32>,
    %c1_178 = arith.constant 1 : index
    %c0_179 = arith.constant 0 : index
    %c0_180 = arith.constant 0 : index
    %166 = vector.load %arg4[%c1_178, %c0_179, %c0_180] : memref<2x18x128xf32, #tpu.memory_space<vmem>>, vector<1x16x128xf32>
    %167 = vector.shape_cast %166 : vector<1x16x128xf32> to vector<16x128xf32>
    %168 = arith.truncf %167 : vector<16x128xf32> to vector<16x128xbf16>
    %c2_181 = arith.constant 2 : index
    %c0_182 = arith.constant 0 : index
    %c0_183 = arith.constant 0 : index
    %c0_184 = arith.constant 0 : index
    %169 = vector.load %arg2[%c2_181, %c0_182, %c0_183, %c0_184] : memref<4x3x128x128xbf16, #tpu.memory_space<vmem>>, vector<1x1x128x128xbf16>
    %170 = vector.shape_cast %169 : vector<1x1x128x128xbf16> to vector<128x128xbf16>
    %cst_185 = arith.constant dense<0.000000e+00> : vector<16x128xf32>
    %171 = tpu.matmul %168, %170, %cst_185 {dimension_numbers = #tpu.dot_dimension_numbers<[1], [0], [0], [1], [0, 0, 1, 1], [], []>} : vector<16x128xbf16>, vector<128x128xbf16>, vector<16x128xf32> -> vector<16x128xf32>
    %c1_186 = arith.constant 1 : index
    %c1_187 = arith.constant 1 : index
    %c0_188 = arith.constant 0 : index
    %172 = vector.load %arg4[%c1_186, %c1_187, %c0_188] : memref<2x18x128xf32, #tpu.memory_space<vmem>>, vector<1x16x128xf32>
    %173 = vector.shape_cast %172 : vector<1x16x128xf32> to vector<16x128xf32>
    %174 = arith.truncf %173 : vector<16x128xf32> to vector<16x128xbf16>
    %c2_189 = arith.constant 2 : index
    %c1_190 = arith.constant 1 : index
    %c0_191 = arith.constant 0 : index
    %c0_192 = arith.constant 0 : index
    %175 = vector.load %arg2[%c2_189, %c1_190, %c0_191, %c0_192] : memref<4x3x128x128xbf16, #tpu.memory_space<vmem>>, vector<1x1x128x128xbf16>
    %176 = vector.shape_cast %175 : vector<1x1x128x128xbf16> to vector<128x128xbf16>
    %cst_193 = arith.constant dense<0.000000e+00> : vector<16x128xf32>
    %177 = tpu.matmul %174, %176, %cst_193 {dimension_numbers = #tpu.dot_dimension_numbers<[1], [0], [0], [1], [0, 0, 1, 1], [], []>} : vector<16x128xbf16>, vector<128x128xbf16>, vector<16x128xf32> -> vector<16x128xf32>
    %178 = arith.addf %171, %177 : vector<16x128xf32>
    %c1_194 = arith.constant 1 : index
    %c2_195 = arith.constant 2 : index
    %c0_196 = arith.constant 0 : index
    %179 = vector.load %arg4[%c1_194, %c2_195, %c0_196] : memref<2x18x128xf32, #tpu.memory_space<vmem>>, vector<1x16x128xf32>
    %180 = vector.shape_cast %179 : vector<1x16x128xf32> to vector<16x128xf32>
    %181 = arith.truncf %180 : vector<16x128xf32> to vector<16x128xbf16>
    %c2_197 = arith.constant 2 : index
    %c2_198 = arith.constant 2 : index
    %c0_199 = arith.constant 0 : index
    %c0_200 = arith.constant 0 : index
    %182 = vector.load %arg2[%c2_197, %c2_198, %c0_199, %c0_200] : memref<4x3x128x128xbf16, #tpu.memory_space<vmem>>, vector<1x1x128x128xbf16>
    %183 = vector.shape_cast %182 : vector<1x1x128x128xbf16> to vector<128x128xbf16>
    %cst_201 = arith.constant dense<0.000000e+00> : vector<16x128xf32>
    %184 = tpu.matmul %181, %183, %cst_201 {dimension_numbers = #tpu.dot_dimension_numbers<[1], [0], [0], [1], [0, 0, 1, 1], [], []>} : vector<16x128xbf16>, vector<128x128xbf16>, vector<16x128xf32> -> vector<16x128xf32>
    %185 = arith.addf %178, %184 : vector<16x128xf32>
    %cst_202 = arith.constant 0.000000e+00 : f32
    %186 = vector.broadcast %cst_202 : f32 to vector<16x128xf32>
    %187 = arith.maximumf %185, %186 : vector<16x128xf32>
    %c1_203 = arith.constant 1 : index
    %c1_204 = arith.constant 1 : index
    %c0_205 = arith.constant 0 : index
    %188 = vector.load %arg5[%c1_203, %c1_204, %c0_205] : memref<2x18x128xf32, #tpu.memory_space<vmem>>, vector<1x16x128xf32>
    %189 = vector.shape_cast %188 : vector<1x16x128xf32> to vector<16x128xf32>
    %190 = vector.shape_cast %187 : vector<16x128xf32> to vector<1x16x128xf32>
    tpu.vector_store %arg5[%c1_203, %c1_204, %c0_205], %190 {strides = array<i32>} : memref<2x18x128xf32, #tpu.memory_space<vmem>>, vector<1x16x128xf32>,
    %c0_206 = arith.constant 0 : index
    %c0_207 = arith.constant 0 : index
    %c0_208 = arith.constant 0 : index
    %191 = vector.load %arg5[%c0_206, %c0_207, %c0_208] : memref<2x18x128xf32, #tpu.memory_space<vmem>>, vector<1x16x128xf32>
    %192 = vector.shape_cast %191 : vector<1x16x128xf32> to vector<16x128xf32>
    %193 = arith.truncf %192 : vector<16x128xf32> to vector<16x128xbf16>
    %c3 = arith.constant 3 : index
    %c0_209 = arith.constant 0 : index
    %c0_210 = arith.constant 0 : index
    %c0_211 = arith.constant 0 : index
    %194 = vector.load %arg2[%c3, %c0_209, %c0_210, %c0_211] : memref<4x3x128x128xbf16, #tpu.memory_space<vmem>>, vector<1x1x128x128xbf16>
    %195 = vector.shape_cast %194 : vector<1x1x128x128xbf16> to vector<128x128xbf16>
    %cst_212 = arith.constant dense<0.000000e+00> : vector<16x128xf32>
    %196 = tpu.matmul %193, %195, %cst_212 {dimension_numbers = #tpu.dot_dimension_numbers<[1], [0], [0], [1], [0, 0, 1, 1], [], []>} : vector<16x128xbf16>, vector<128x128xbf16>, vector<16x128xf32> -> vector<16x128xf32>
    %c0_213 = arith.constant 0 : index
    %c1_214 = arith.constant 1 : index
    %c0_215 = arith.constant 0 : index
    %197 = vector.load %arg5[%c0_213, %c1_214, %c0_215] : memref<2x18x128xf32, #tpu.memory_space<vmem>>, vector<1x16x128xf32>
    %198 = vector.shape_cast %197 : vector<1x16x128xf32> to vector<16x128xf32>
    %199 = arith.truncf %198 : vector<16x128xf32> to vector<16x128xbf16>
    %c3_216 = arith.constant 3 : index
    %c1_217 = arith.constant 1 : index
    %c0_218 = arith.constant 0 : index
    %c0_219 = arith.constant 0 : index
    %200 = vector.load %arg2[%c3_216, %c1_217, %c0_218, %c0_219] : memref<4x3x128x128xbf16, #tpu.memory_space<vmem>>, vector<1x1x128x128xbf16>
    %201 = vector.shape_cast %200 : vector<1x1x128x128xbf16> to vector<128x128xbf16>
    %cst_220 = arith.constant dense<0.000000e+00> : vector<16x128xf32>
    %202 = tpu.matmul %199, %201, %cst_220 {dimension_numbers = #tpu.dot_dimension_numbers<[1], [0], [0], [1], [0, 0, 1, 1], [], []>} : vector<16x128xbf16>, vector<128x128xbf16>, vector<16x128xf32> -> vector<16x128xf32>
    %203 = arith.addf %196, %202 : vector<16x128xf32>
    %c0_221 = arith.constant 0 : index
    %c2_222 = arith.constant 2 : index
    %c0_223 = arith.constant 0 : index
    %204 = vector.load %arg5[%c0_221, %c2_222, %c0_223] : memref<2x18x128xf32, #tpu.memory_space<vmem>>, vector<1x16x128xf32>
    %205 = vector.shape_cast %204 : vector<1x16x128xf32> to vector<16x128xf32>
    %206 = arith.truncf %205 : vector<16x128xf32> to vector<16x128xbf16>
    %c3_224 = arith.constant 3 : index
    %c2_225 = arith.constant 2 : index
    %c0_226 = arith.constant 0 : index
    %c0_227 = arith.constant 0 : index
    %207 = vector.load %arg2[%c3_224, %c2_225, %c0_226, %c0_227] : memref<4x3x128x128xbf16, #tpu.memory_space<vmem>>, vector<1x1x128x128xbf16>
    %208 = vector.shape_cast %207 : vector<1x1x128x128xbf16> to vector<128x128xbf16>
    %cst_228 = arith.constant dense<0.000000e+00> : vector<16x128xf32>
    %209 = tpu.matmul %206, %208, %cst_228 {dimension_numbers = #tpu.dot_dimension_numbers<[1], [0], [0], [1], [0, 0, 1, 1], [], []>} : vector<16x128xbf16>, vector<128x128xbf16>, vector<16x128xf32> -> vector<16x128xf32>
    %210 = arith.addf %203, %209 : vector<16x128xf32>
    %cst_229 = arith.constant 0.000000e+00 : f32
    %211 = vector.broadcast %cst_229 : f32 to vector<16x128xf32>
    %212 = arith.maximumf %210, %211 : vector<16x128xf32>
    %c0_230 = arith.constant 0 : index
    %c1_231 = arith.constant 1 : index
    %c0_232 = arith.constant 0 : index
    %213 = vector.load %arg4[%c0_230, %c1_231, %c0_232] : memref<2x18x128xf32, #tpu.memory_space<vmem>>, vector<1x16x128xf32>
    %214 = vector.shape_cast %213 : vector<1x16x128xf32> to vector<16x128xf32>
    %215 = arith.addf %212, %214 : vector<16x128xf32>
    %c0_233 = arith.constant 0 : index
    %c1_234 = arith.constant 1 : index
    %c0_235 = arith.constant 0 : index
    %216 = vector.load %arg4[%c0_233, %c1_234, %c0_235] : memref<2x18x128xf32, #tpu.memory_space<vmem>>, vector<1x16x128xf32>
    %217 = vector.shape_cast %216 : vector<1x16x128xf32> to vector<16x128xf32>
    %218 = vector.shape_cast %215 : vector<16x128xf32> to vector<1x16x128xf32>
    tpu.vector_store %arg4[%c0_233, %c1_234, %c0_235], %218 {strides = array<i32>} : memref<2x18x128xf32, #tpu.memory_space<vmem>>, vector<1x16x128xf32>,
    %c1_236 = arith.constant 1 : index
    %c0_237 = arith.constant 0 : index
    %c0_238 = arith.constant 0 : index
    %219 = vector.load %arg5[%c1_236, %c0_237, %c0_238] : memref<2x18x128xf32, #tpu.memory_space<vmem>>, vector<1x16x128xf32>
    %220 = vector.shape_cast %219 : vector<1x16x128xf32> to vector<16x128xf32>
    %221 = arith.truncf %220 : vector<16x128xf32> to vector<16x128xbf16>
    %c3_239 = arith.constant 3 : index
    %c0_240 = arith.constant 0 : index
    %c0_241 = arith.constant 0 : index
    %c0_242 = arith.constant 0 : index
    %222 = vector.load %arg2[%c3_239, %c0_240, %c0_241, %c0_242] : memref<4x3x128x128xbf16, #tpu.memory_space<vmem>>, vector<1x1x128x128xbf16>
    %223 = vector.shape_cast %222 : vector<1x1x128x128xbf16> to vector<128x128xbf16>
    %cst_243 = arith.constant dense<0.000000e+00> : vector<16x128xf32>
    %224 = tpu.matmul %221, %223, %cst_243 {dimension_numbers = #tpu.dot_dimension_numbers<[1], [0], [0], [1], [0, 0, 1, 1], [], []>} : vector<16x128xbf16>, vector<128x128xbf16>, vector<16x128xf32> -> vector<16x128xf32>
    %c1_244 = arith.constant 1 : index
    %c1_245 = arith.constant 1 : index
    %c0_246 = arith.constant 0 : index
    %225 = vector.load %arg5[%c1_244, %c1_245, %c0_246] : memref<2x18x128xf32, #tpu.memory_space<vmem>>, vector<1x16x128xf32>
    %226 = vector.shape_cast %225 : vector<1x16x128xf32> to vector<16x128xf32>
    %227 = arith.truncf %226 : vector<16x128xf32> to vector<16x128xbf16>
    %c3_247 = arith.constant 3 : index
    %c1_248 = arith.constant 1 : index
    %c0_249 = arith.constant 0 : index
    %c0_250 = arith.constant 0 : index
    %228 = vector.load %arg2[%c3_247, %c1_248, %c0_249, %c0_250] : memref<4x3x128x128xbf16, #tpu.memory_space<vmem>>, vector<1x1x128x128xbf16>
    %229 = vector.shape_cast %228 : vector<1x1x128x128xbf16> to vector<128x128xbf16>
    %cst_251 = arith.constant dense<0.000000e+00> : vector<16x128xf32>
    %230 = tpu.matmul %227, %229, %cst_251 {dimension_numbers = #tpu.dot_dimension_numbers<[1], [0], [0], [1], [0, 0, 1, 1], [], []>} : vector<16x128xbf16>, vector<128x128xbf16>, vector<16x128xf32> -> vector<16x128xf32>
    %231 = arith.addf %224, %230 : vector<16x128xf32>
    %c1_252 = arith.constant 1 : index
    %c2_253 = arith.constant 2 : index
    %c0_254 = arith.constant 0 : index
    %232 = vector.load %arg5[%c1_252, %c2_253, %c0_254] : memref<2x18x128xf32, #tpu.memory_space<vmem>>, vector<1x16x128xf32>
    %233 = vector.shape_cast %232 : vector<1x16x128xf32> to vector<16x128xf32>
    %234 = arith.truncf %233 : vector<16x128xf32> to vector<16x128xbf16>
    %c3_255 = arith.constant 3 : index
    %c2_256 = arith.constant 2 : index
    %c0_257 = arith.constant 0 : index
    %c0_258 = arith.constant 0 : index
    %235 = vector.load %arg2[%c3_255, %c2_256, %c0_257, %c0_258] : memref<4x3x128x128xbf16, #tpu.memory_space<vmem>>, vector<1x1x128x128xbf16>
    %236 = vector.shape_cast %235 : vector<1x1x128x128xbf16> to vector<128x128xbf16>
    %cst_259 = arith.constant dense<0.000000e+00> : vector<16x128xf32>
    %237 = tpu.matmul %234, %236, %cst_259 {dimension_numbers = #tpu.dot_dimension_numbers<[1], [0], [0], [1], [0, 0, 1, 1], [], []>} : vector<16x128xbf16>, vector<128x128xbf16>, vector<16x128xf32> -> vector<16x128xf32>
    %238 = arith.addf %231, %237 : vector<16x128xf32>
    %cst_260 = arith.constant 0.000000e+00 : f32
    %239 = vector.broadcast %cst_260 : f32 to vector<16x128xf32>
    %240 = arith.maximumf %238, %239 : vector<16x128xf32>
    %c1_261 = arith.constant 1 : index
    %c1_262 = arith.constant 1 : index
    %c0_263 = arith.constant 0 : index
    %241 = vector.load %arg4[%c1_261, %c1_262, %c0_263] : memref<2x18x128xf32, #tpu.memory_space<vmem>>, vector<1x16x128xf32>
    %242 = vector.shape_cast %241 : vector<1x16x128xf32> to vector<16x128xf32>
    %243 = arith.addf %240, %242 : vector<16x128xf32>
    %c1_264 = arith.constant 1 : index
    %c1_265 = arith.constant 1 : index
    %c0_266 = arith.constant 0 : index
    %244 = vector.load %arg4[%c1_264, %c1_265, %c0_266] : memref<2x18x128xf32, #tpu.memory_space<vmem>>, vector<1x16x128xf32>
    %245 = vector.shape_cast %244 : vector<1x16x128xf32> to vector<16x128xf32>
    %246 = vector.shape_cast %243 : vector<16x128xf32> to vector<1x16x128xf32>
    tpu.vector_store %arg4[%c1_264, %c1_265, %c0_266], %246 {strides = array<i32>} : memref<2x18x128xf32, #tpu.memory_space<vmem>>, vector<1x16x128xf32>,
    %c0_267 = arith.constant 0 : index
    %c1_268 = arith.constant 1 : index
    %c0_269 = arith.constant 0 : index
    %247 = vector.load %arg4[%c0_267, %c1_268, %c0_269] : memref<2x18x128xf32, #tpu.memory_space<vmem>>, vector<1x16x128xf32>
    %248 = vector.shape_cast %247 : vector<1x16x128xf32> to vector<16x128xf32>
    %c0_270 = arith.constant 0 : index
    %c0_271 = arith.constant 0 : index
    %c0_272 = arith.constant 0 : index
    %249 = vector.load %arg3[%c0_270, %c0_271, %c0_272] : memref<2x16x128xf32, #tpu.memory_space<vmem>>, vector<1x16x128xf32>
    %250 = vector.shape_cast %249 : vector<1x16x128xf32> to vector<16x128xf32>
    %251 = vector.shape_cast %248 : vector<16x128xf32> to vector<1x16x128xf32>
    tpu.vector_store %arg3[%c0_270, %c0_271, %c0_272], %251 {strides = array<i32>} : memref<2x16x128xf32, #tpu.memory_space<vmem>>, vector<1x16x128xf32>,
    %c1_273 = arith.constant 1 : index
    %c1_274 = arith.constant 1 : index
    %c0_275 = arith.constant 0 : index
    %252 = vector.load %arg4[%c1_273, %c1_274, %c0_275] : memref<2x18x128xf32, #tpu.memory_space<vmem>>, vector<1x16x128xf32>
    %253 = vector.shape_cast %252 : vector<1x16x128xf32> to vector<16x128xf32>
    %c1_276 = arith.constant 1 : index
    %c0_277 = arith.constant 0 : index
    %c0_278 = arith.constant 0 : index
    %254 = vector.load %arg3[%c1_276, %c0_277, %c0_278] : memref<2x16x128xf32, #tpu.memory_space<vmem>>, vector<1x16x128xf32>
    %255 = vector.shape_cast %254 : vector<1x16x128xf32> to vector<16x128xf32>
    %256 = vector.shape_cast %253 : vector<16x128xf32> to vector<1x16x128xf32>
    tpu.vector_store %arg3[%c1_276, %c0_277, %c0_278], %256 {strides = array<i32>} : memref<2x16x128xf32, #tpu.memory_space<vmem>>, vector<1x16x128xf32>,
    return
  }
  func.func @transform_0(%arg0: i32) -> (i32, i32, i32) {
    %c0_i32 = arith.constant 0 : i32
    %c0_i32_0 = arith.constant 0 : i32
    %c0_i32_1 = arith.constant 0 : i32
    return %arg0, %c0_i32, %c0_i32_0 : i32, i32, i32
  }
  func.func @transform_1(%arg0: i32) -> (i32, i32, i32, i32) {
    %c0_i32 = arith.constant 0 : i32
    %c0_i32_0 = arith.constant 0 : i32
    %c0_i32_1 = arith.constant 0 : i32
    %c0_i32_2 = arith.constant 0 : i32
    %c0_i32_3 = arith.constant 0 : i32
    return %c0_i32, %c0_i32_0, %c0_i32_1, %c0_i32_2 : i32, i32, i32, i32
  }
  func.func @transform_2(%arg0: i32) -> (i32, i32, i32) {
    %c0_i32 = arith.constant 0 : i32
    %c0_i32_0 = arith.constant 0 : i32
    %c0_i32_1 = arith.constant 0 : i32
    return %arg0, %c0_i32, %c0_i32_0 : i32, i32, i32
  }
}

</mosaic_0001>

<bundles_post_ra>
// kernel: multiple_residuals_forward.1
= control target key start
LH: loop header
LB: loop body
LE: loop exit
PB: predicated region body
PF: predicated region fallthrough
CT: control target
= control target key end

     0   :  { %v3379_v3 = vmov 0.0   ;;  %s4035_s1 = inlined_call_operand.vmem [shape: bf16[4,3,128,128], index: 1, kind: input, shape index: {}]   ;;  %s4036_s0 = inlined_call_operand.vmem [shape: f32[2,16,128], index: 0, kind: input, shape index: {}]   ;;  %s4037_s2 = inlined_call_operand.vmem [shape: f32[2,16,128], index: 2, kind: output, shape index: {}]  }
   0x1   :  { %v3201_v0 = vld [vmem:[%s4035_s1 + $0x78] sm:$0xff]  ;;  %12 = vst [vmem:[#allocation2 + $0x11] sm:$0x1] %v3379_v3  ;;  %v3200_v4 = vld [vmem:[%s4035_s1 + $0x70] sm:$0xff]  ;;  %v3199_v8 = vld [vmem:[%s4035_s1 + $0x68] sm:$0xff] }
   0x2   :  { %v3193_v1 = vld [vmem:[%s4035_s1 + $0x38] sm:$0xff]  ;;  %11 = vst [vmem:[#allocation2] sm:$0x1] %v3379_v3  ;;  %117 = vmatpush.bf16.msra.mxu0 %v3201_v0  ;;  %v3192_v5 = vld [vmem:[%s4035_s1 + $0x30] sm:$0xff]  ;;  %v3191_v9 = vld [vmem:[%s4035_s1 + $0x28] sm:$0xff] }
   0x3   :  { %v3209_v2 = vld [vmem:[%s4035_s1 + $0xb8] sm:$0xff]  ;;  %179 = vmatpush.bf16.msra.mxu1 %v3193_v1  ;;  %13 = vst [vmem:[#allocation3] sm:$0x1] %v3379_v3  ;;  %v3208_v6 = vld [vmem:[%s4035_s1 + $0xb0] sm:$0xff]  ;;  %v3207_v10 = vld [vmem:[%s4035_s1 + $0xa8] sm:$0xff] }
   0x4   :  { %261 = vmatpush.bf16.msra.mxu2 %v3209_v2  ;;  %14 = vst [vmem:[#allocation3 + $0x11] sm:$0x1] %v3379_v3  ;;  %v3225_v7 = vld [vmem:[%s4035_s1 + $0x78] sm:$0xff]  ;;  %v3224_v11 = vld [vmem:[%s4035_s1 + $0x70] sm:$0xff]  ;;  %v3198_v12 = vld [vmem:[%s4035_s1 + $0x60] sm:$0xff] }
   0x5   :  { %20 = vst [vmem:[#allocation2 + $0x18] sm:$0x1] %v3379_v3  ;;  %367 = vmatpush.bf16.msra.mxu3 %v3225_v7  ;;  %v3190_v13 = vld [vmem:[%s4035_s1 + $0x20] sm:$0xff]  ;;  %v3442_v15 = vld [vmem:[%s4036_s0 + $0x8] sm:$0xff]  ;;  %v3197_v18 = vld [vmem:[%s4035_s1 + $0x58] sm:$0xff] }
   0x6   :  { %21 = vst [vmem:[#allocation2 + $0x29] sm:$0x1] %v3379_v3  ;;  %118 = vmatpush.bf16.msra.mxu0 %v3200_v4  ;;  %v3437_v14 = vld [vmem:[%s4036_s0] sm:$0xff]  ;;  %v3223_v17 = vld [vmem:[%s4035_s1 + $0x68] sm:$0xff]  ;;  %v3189_v19 = vld [vmem:[%s4035_s1 + $0x18] sm:$0xff] }
   0x7   :  { %180 = vmatpush.bf16.msra.mxu1 %v3192_v5  ;;  %23 = vst [vmem:[#allocation3 + $0x18] sm:$0x1] %v3379_v3  ;;  %v3206_v16 = vld [vmem:[%s4035_s1 + $0xa0] sm:$0xff]  ;;  %v3461_v20 = vld [vmem:[%s4036_s0 + $0x10] sm:$0xff]  ;;  %v3205_v21 = vld [vmem:[%s4035_s1 + $0x98] sm:$0xff]  ;;  %v51_v42 = vpack.c.bf16 %v3442_v15, %v3437_v14 }
   0x8   :  { %262 = vmatpush.bf16.msra.mxu2 %v3208_v6  ;;  %24 = vst [vmem:[#allocation3 + $0x29] sm:$0x1] %v3379_v3  ;;  %v3222_v22 = vld [vmem:[%s4035_s1 + $0x60] sm:$0xff]  ;;  %v3472_v23 = vld [vmem:[%s4036_s0 + $0x18] sm:$0xff]  ;;  %v3196_v24 = vld [vmem:[%s4035_s1 + $0x50] sm:$0xff] }
   0x9   :  { %368 = vmatpush.bf16.msra.mxu3 %v3224_v11  ;;  %17 = vst [vmem:[#allocation2 + $0x1] sm:$0xff] %v3437_v14  ;;  %v3188_v25 = vld [vmem:[%s4035_s1 + $0x10] sm:$0xff]  ;;  %v3221_v27 = vld [vmem:[%s4035_s1 + $0x58] sm:$0xff]  ;;  %v3195_v28 = vld [vmem:[%s4035_s1 + $0x48] sm:$0xff]  ;;  %v302_v51 = vpack.c.bf16 %v3472_v23, %v3461_v20 }
   0xa   :  { %119 = vmatpush.bf16.msra.mxu0 %v3199_v8  ;;  %18 = vst [vmem:[#allocation2 + $0x9] sm:$0xff] %v3442_v15  ;;  %v3204_v26 = vld [vmem:[%s4035_s1 + $0x90] sm:$0xff]  ;;  %v3187_v29 = vld [vmem:[%s4035_s1 + $0x8] sm:$0xff]  ;;  %v3194_v32 = vld [vmem:[%s4035_s1 + $0x40] sm:$0xff] }
   0xb   :  { %181 = vmatpush.bf16.msra.mxu1 %v3191_v9  ;;  %28 = vst [vmem:[#allocation2 + $0x19] sm:$0xff] %v3461_v20  ;;  %v3203_v30 = vld [vmem:[%s4035_s1 + $0x88] sm:$0xff]  ;;  %v3220_v31 = vld [vmem:[%s4035_s1 + $0x50] sm:$0xff]  ;;  %v3186_v33 = vld [vmem:[%s4035_s1] sm:$0xff] }
   0xc   :  { %263 = vmatpush.bf16.msra.mxu2 %v3207_v10  ;;  %29 = vst [vmem:[#allocation2 + $0x21] sm:$0xff] %v3472_v23  ;;  %v3202_v34 = vld [vmem:[%s4035_s1 + $0x80] sm:$0xff]  ;;  %v3217_v37 = vld [vmem:[%s4035_s1 + $0x38] sm:$0xff]  ;;  %v3219_v41 = vld [vmem:[%s4035_s1 + $0x48] sm:$0xff] }
   0xd   :  { %369 = vmatpush.bf16.msra.mxu3 %v3223_v17  ;;  %v3233_v40 = vld [vmem:[%s4035_s1 + $0xb8] sm:$0xff]  ;;  %v3216_v45 = vld [vmem:[%s4035_s1 + $0x30] sm:$0xff]  ;;  %v3218_v48 = vld [vmem:[%s4035_s1 + $0x40] sm:$0xff] }
   0xe   :  { %120 = vmatpush.bf16.msra.mxu0 %v3198_v12  ;;  %v3249_v46 = vld [vmem:[%s4035_s1 + $0x138] sm:$0xff]  ;;  %v3232_v47 = vld [vmem:[%s4035_s1 + $0xb0] sm:$0xff]  ;;  %v3215_v50 = vld [vmem:[%s4035_s1 + $0x28] sm:$0xff] }
   0xf   :  { %182 = vmatpush.bf16.msra.mxu1 %v3190_v13  ;;  %v3241_v49 = vld [vmem:[%s4035_s1 + $0xf8] sm:$0xff]  ;;  %v3231_v52 = vld [vmem:[%s4035_s1 + $0xa8] sm:$0xff]  ;;  %v3248_v53 = vld [vmem:[%s4035_s1 + $0x130] sm:$0xff] }
  0x10   :  { %264 = vmatpush.bf16.msra.mxu2 %v3206_v16  ;;  %v30_v35 = vld [vmem:[#allocation2] sm:$0xff]  ;;  %v3240_v54 = vld [vmem:[%s4035_s1 + $0xf0] sm:$0xff]  ;;  %v3247_v57 = vld [vmem:[%s4035_s1 + $0x128] sm:$0xff] }
  0x11   :  { %370 = vmatpush.bf16.msra.mxu3 %v3222_v22  ;;  %v31_v36 = vld [vmem:[#allocation2 + $0x8] sm:$0xff]  ;;  %v3214_v55 = vld [vmem:[%s4035_s1 + $0x20] sm:$0xff]  ;;  %v3213_v59 = vld [vmem:[%s4035_s1 + $0x18] sm:$0xff] }
  0x12   :  { %121 = vmatpush.bf16.msra.mxu0 %v3197_v18  ;;  %v193_v38 = vld [vmem:[#allocation2 + $0x2] sm:$0xff]  ;;  %v194_v39 = vld [vmem:[#allocation2 + $0xa] sm:$0xff]  ;;  %v32_v43 = vpack.c.bf16 %v31_v36, %v30_v35  ;;  %v3229_v60 = vld [vmem:[%s4035_s1 + $0x98] sm:$0xff] }
  0x13   :  { %183 = vmatpush.bf16.msra.mxu1 %v3189_v19  ;;  %v195_v44 = vpack.c.bf16 %v194_v39, %v193_v38  ;;  %v3230_v56 = vld [vmem:[%s4035_s1 + $0xa0] sm:$0xff]  ;;  %v3239_v58 = vld [vmem:[%s4035_s1 + $0xe8] sm:$0xff]  ;;  %v3212_v61 = vld [vmem:[%s4035_s1 + $0x10] sm:$0xff] }
  0x14   :  { %265 = vmatpush.bf16.msra.mxu2 %v3205_v21  ;;  %v3228_v62 = vld [vmem:[%s4035_s1 + $0x90] sm:$0xff]  ;;  %v3211_v63 = vld [vmem:[%s4035_s1 + $0x8] sm:$0xff]  ;;  %v3210_v1 = vld [vmem:[%s4035_s1] sm:$0xff] }
  0x15   :  { %371 = vmatpush.bf16.msra.mxu3 %v3221_v27  ;;  %v3227_v0 = vld [vmem:[%s4035_s1 + $0x88] sm:$0xff]  ;;  %v3226_v2 = vld [vmem:[%s4035_s1 + $0x80] sm:$0xff]  ;;  %v281_v3 = vld [vmem:[#allocation2 + $0x18] sm:$0xff] }
  0x16   :  { %122 = vmatpush.bf16.msra.mxu0 %v3196_v24  ;;  %v282_v4 = vld [vmem:[#allocation2 + $0x20] sm:$0xff]  ;;  %v3257_v7 = vld [vmem:[%s4035_s1 + $0x178] sm:$0xff]  ;;  %v3256_v10 = vld [vmem:[%s4035_s1 + $0x170] sm:$0xff] }
  0x17   :  { %184 = vmatpush.bf16.msra.mxu1 %v3188_v25  ;;  %v443_v5 = vld [vmem:[#allocation2 + $0x1a] sm:$0xff]  ;;  %v444_v6 = vld [vmem:[#allocation2 + $0x22] sm:$0xff]  ;;  %v283_v8 = vpack.c.bf16 %v282_v4, %v281_v3  ;;  %v3244_v19 = vld [vmem:[%s4035_s1 + $0x110] sm:$0xff] }
  0x18   :  { %266 = vmatpush.bf16.msra.mxu2 %v3204_v26  ;;  %v445_v9 = vpack.c.bf16 %v444_v6, %v443_v5  ;;  %v3246_v11 = vld [vmem:[%s4035_s1 + $0x120] sm:$0xff]  ;;  %v3255_v13 = vld [vmem:[%s4035_s1 + $0x168] sm:$0xff]  ;;  %v3245_v16 = vld [vmem:[%s4035_s1 + $0x118] sm:$0xff] }
  0x19   :  { %372 = vmatpush.bf16.msra.mxu3 %v3220_v31  ;;  %v3238_v12 = vld [vmem:[%s4035_s1 + $0xe0] sm:$0xff]  ;;  %v3237_v17 = vld [vmem:[%s4035_s1 + $0xd8] sm:$0xff]  ;;  %v3236_v21 = vld [vmem:[%s4035_s1 + $0xd0] sm:$0xff] }
  0x1a   :  { %123 = vmatpush.bf16.msra.mxu0 %v3195_v28  ;;  %v3254_v18 = vld [vmem:[%s4035_s1 + $0x160] sm:$0xff]  ;;  %v3253_v22 = vld [vmem:[%s4035_s1 + $0x158] sm:$0xff]  ;;  %v3243_v24 = vld [vmem:[%s4035_s1 + $0x108] sm:$0xff] }
  0x1b   :  { %185 = vmatpush.bf16.msra.mxu1 %v3187_v29  ;;  %v3273_v25 = vld [vmem:[%s4035_s1 + $0x138] sm:$0xff]  ;;  %v3235_v26 = vld [vmem:[%s4035_s1 + $0xc8] sm:$0xff]  ;;  %v3252_v27 = vld [vmem:[%s4035_s1 + $0x150] sm:$0xff] }
  0x1c   :  { %267 = vmatpush.bf16.msra.mxu2 %v3203_v30  ;;  %v3242_v28 = vld [vmem:[%s4035_s1 + $0x100] sm:$0xff]  ;;  %v3272_v29 = vld [vmem:[%s4035_s1 + $0x130] sm:$0xff]  ;;  %v3251_v31 = vld [vmem:[%s4035_s1 + $0x148] sm:$0xff] }
  0x1d   :  { %373 = vmatpush.bf16.msra.mxu3 %v3219_v41  ;;  %v3234_v30 = vld [vmem:[%s4035_s1 + $0xc0] sm:$0xff]  ;;  %v3271_v35 = vld [vmem:[%s4035_s1 + $0x128] sm:$0xff]  ;;  %v3269_v41 = vld [vmem:[%s4035_s1 + $0x118] sm:$0xff] }
  0x1e   :  { %124 = vmatpush.bf16.msra.mxu0 %v3194_v32  ;;  %v3265_v32 = vld [vmem:[%s4035_s1 + $0xf8] sm:$0xff]  ;;  %v3250_v36 = vld [vmem:[%s4035_s1 + $0x140] sm:$0xff]  ;;  %v3263_v39 = vld [vmem:[%s4035_s1 + $0xe8] sm:$0xff] }
  0x1f   :  { %186 = vmatpush.bf16.msra.mxu1 %v3186_v33  ;;  %v3281_v33 = vld [vmem:[%s4035_s1 + $0x178] sm:$0xff]  ;;  %v3270_v38 = vld [vmem:[%s4035_s1 + $0x120] sm:$0xff] }
  0x20   :  { %268 = vmatpush.bf16.msra.mxu2 %v3202_v34  ;;  %v3264_v34 = vld [vmem:[%s4035_s1 + $0xf0] sm:$0xff]  ;;  %v3297_v4 = vld [vmem:[%s4035_s1 + $0x1f8] sm:$0xff] }
  0x21   :  { %125 = vmatmul.bf16.vlgmr.msra.gmra.mxu0 %v51_v42  ;;  %374 = vmatpush.bf16.msra.mxu3 %v3218_v48  ;;  %v3261_v48 = vld [vmem:[%s4035_s1 + $0xd8] sm:$0xff] }
  0x22   :  { %429 = vmatpush.bf16.msrb.mxu0 %v3217_v37  ;;  %187 = vmatmul.bf16.vlgmr.msra.gmra.mxu1 %v32_v43  ;;  %v3280_v37 = vld [vmem:[%s4035_s1 + $0x170] sm:$0xff]  ;;  %v3289_v5 = vld [vmem:[%s4035_s1 + $0x1b8] sm:$0xff] }
  0x23   :  { %510 = vmatpush.bf16.msrb.mxu1 %v3233_v40  ;;  %269 = vmatmul.bf16.vlgmr.msra.gmra.mxu2 %v195_v44  ;;  %v3279_v40 = vld [vmem:[%s4035_s1 + $0x168] sm:$0xff]  ;;  %v3262_v44 = vld [vmem:[%s4035_s1 + $0xe0] sm:$0xff] }
  0x24   :  { %618 = vmatpush.bf16.msrb.mxu2 %v3249_v46  ;;  %375 = vmatmul.bf16.vlgmr.msra.gmra.mxu3 %v302_v51  ;;  %v3268_v46 = vld [vmem:[%s4035_s1 + $0x110] sm:$0xff] }
  0x25   :  { %680 = vmatpush.bf16.msrb.mxu3 %v3241_v49  ;;  %v3277_v49 = vld [vmem:[%s4035_s1 + $0x158] sm:$0xff] }
  0x26   :  { %430 = vmatpush.bf16.msrb.mxu0 %v3216_v45  ;;  %v3278_v45 = vld [vmem:[%s4035_s1 + $0x160] sm:$0xff] }
  0x27   :  { %511 = vmatpush.bf16.msrb.mxu1 %v3232_v47 }
  0x28   :  { %619 = vmatpush.bf16.msrb.mxu2 %v3248_v53 }
  0x29   :  { %681 = vmatpush.bf16.msrb.mxu3 %v3240_v54 }
  0x2a   :  { %431 = vmatpush.bf16.msrb.mxu0 %v3215_v50  ;;  %v3267_v50 = vld [vmem:[%s4035_s1 + $0x108] sm:$0xff] }
  0x2b   :  { %512 = vmatpush.bf16.msrb.mxu1 %v3231_v52 }
  0x2c   :  { %620 = vmatpush.bf16.msrb.mxu2 %v3247_v57  ;;  %v3276_v57 = vld [vmem:[%s4035_s1 + $0x150] sm:$0xff] }
  0x2d   :  { %682 = vmatpush.bf16.msrb.mxu3 %v3239_v58  ;;  %v3266_v58 = vld [vmem:[%s4035_s1 + $0x100] sm:$0xff] }
  0x2e   :  { %432 = vmatpush.bf16.msrb.mxu0 %v3214_v55 }
  0x2f   :  { %513 = vmatpush.bf16.msrb.mxu1 %v3230_v56  ;;  %v3260_v56 = vld [vmem:[%s4035_s1 + $0xd0] sm:$0xff] }
  0x30   :  { %621 = vmatpush.bf16.msrb.mxu2 %v3246_v11 }
  0x31   :  { %683 = vmatpush.bf16.msrb.mxu3 %v3238_v12 }
  0x32   :  { %433 = vmatpush.bf16.msrb.mxu0 %v3213_v59 }
  0x33   :  { %514 = vmatpush.bf16.msrb.mxu1 %v3229_v60  ;;  %v3259_v60 = vld [vmem:[%s4035_s1 + $0xc8] sm:$0xff] }
  0x34   :  { %622 = vmatpush.bf16.msrb.mxu2 %v3245_v16 }
  0x35   :  { %684 = vmatpush.bf16.msrb.mxu3 %v3237_v17 }
  0x36   :  { %434 = vmatpush.bf16.msrb.mxu0 %v3212_v61  ;;  %v3275_v61 = vld [vmem:[%s4035_s1 + $0x148] sm:$0xff] }
  0x37   :  { %515 = vmatpush.bf16.msrb.mxu1 %v3228_v62 }
  0x38   :  { %623 = vmatpush.bf16.msrb.mxu2 %v3244_v19 }
  0x39   :  { %685 = vmatpush.bf16.msrb.mxu3 %v3236_v21 }
  0x3a   :  { %435 = vmatpush.bf16.msrb.mxu0 %v3211_v63 }
  0x3b   :  { %516 = vmatpush.bf16.msrb.mxu1 %v3227_v0  ;;  %v3258_v0 = vld [vmem:[%s4035_s1 + $0xc0] sm:$0xff] }
  0x3c   :  { %624 = vmatpush.bf16.msrb.mxu2 %v3243_v24 }
  0x3d   :  { %686 = vmatpush.bf16.msrb.mxu3 %v3235_v26 }
  0x3e   :  { %436 = vmatpush.bf16.msrb.mxu0 %v3210_v1  ;;  %v3274_v1 = vld [vmem:[%s4035_s1 + $0x140] sm:$0xff] }
  0x3f   :  { %517 = vmatpush.bf16.msrb.mxu1 %v3226_v2 }
  0x40   :  { %625 = vmatpush.bf16.msrb.mxu2 %v3242_v28 }
  0x41   :  { %437 = vmatmul.bf16.vlgmr.msrb.gmra.mxu0 %v283_v8  ;;  %687 = vmatpush.bf16.msrb.mxu3 %v3234_v30 }
  0x42   :  { %762 = vmatpush.bf16.msra.mxu0 %v3257_v7  ;;  %518 = vmatmul.bf16.vlgmr.msrb.gmra.mxu1 %v445_v9 }
  0x43   :  { %872 = vmatpush.bf16.msra.mxu1 %v3273_v25 }
  0x44   :  { %934 = vmatpush.bf16.msra.mxu2 %v3265_v32 }
  0x45   :  { %1015 = vmatpush.bf16.msra.mxu3 %v3281_v33 }
  0x46   :  { %763 = vmatpush.bf16.msra.mxu0 %v3256_v10 }
  0x47   :  { %873 = vmatpush.bf16.msra.mxu1 %v3272_v29 }
  0x48   :  { %935 = vmatpush.bf16.msra.mxu2 %v3264_v34 }
  0x49   :  { %1016 = vmatpush.bf16.msra.mxu3 %v3280_v37  ;;  %v3305_v37 = vld [vmem:[%s4035_s1 + $0x238] sm:$0xff] }
  0x4a   :  { %764 = vmatpush.bf16.msra.mxu0 %v3255_v13 }
  0x4b   :  { %874 = vmatpush.bf16.msra.mxu1 %v3271_v35  ;;  %v3296_v35 = vld [vmem:[%s4035_s1 + $0x1f0] sm:$0xff] }
  0x4c   :  { %936 = vmatpush.bf16.msra.mxu2 %v3263_v39  ;;  %v3287_v39 = vld [vmem:[%s4035_s1 + $0x1a8] sm:$0xff] }
  0x4d   :  { %1017 = vmatpush.bf16.msra.mxu3 %v3279_v40  ;;  %v3304_v40 = vld [vmem:[%s4035_s1 + $0x230] sm:$0xff] }
  0x4e   :  { %765 = vmatpush.bf16.msra.mxu0 %v3254_v18 }
  0x4f   :  { %875 = vmatpush.bf16.msra.mxu1 %v3270_v38  ;;  %v3295_v38 = vld [vmem:[%s4035_s1 + $0x1e8] sm:$0xff] }
  0x50   :  { %937 = vmatpush.bf16.msra.mxu2 %v3262_v44  ;;  %v3293_v44 = vld [vmem:[%s4035_s1 + $0x1d8] sm:$0xff] }
  0x51   :  { %1018 = vmatpush.bf16.msra.mxu3 %v3278_v45  ;;  %v3285_v45 = vld [vmem:[%s4035_s1 + $0x198] sm:$0xff] }
  0x52   :  { %766 = vmatpush.bf16.msra.mxu0 %v3253_v22 }
  0x53   :  { %876 = vmatpush.bf16.msra.mxu1 %v3269_v41  ;;  %v3294_v41 = vld [vmem:[%s4035_s1 + $0x1e0] sm:$0xff] }
  0x54   :  { %938 = vmatpush.bf16.msra.mxu2 %v3261_v48  ;;  %v3284_v48 = vld [vmem:[%s4035_s1 + $0x190] sm:$0xff] }
  0x55   :  { %1019 = vmatpush.bf16.msra.mxu3 %v3277_v49  ;;  %v3301_v49 = vld [vmem:[%s4035_s1 + $0x218] sm:$0xff] }
  0x56   :  { %767 = vmatpush.bf16.msra.mxu0 %v3252_v27 }
  0x57   :  { %877 = vmatpush.bf16.msra.mxu1 %v3268_v46  ;;  %v3302_v46 = vld [vmem:[%s4035_s1 + $0x220] sm:$0xff] }
  0x58   :  { %939 = vmatpush.bf16.msra.mxu2 %v3260_v56  ;;  %v3282_v56 = vld [vmem:[%s4035_s1 + $0x180] sm:$0xff] }
  0x59   :  { %1020 = vmatpush.bf16.msra.mxu3 %v3276_v57  ;;  %v3299_v57 = vld [vmem:[%s4035_s1 + $0x208] sm:$0xff] }
  0x5a   :  { %768 = vmatpush.bf16.msra.mxu0 %v3251_v31 }
  0x5b   :  { %878 = vmatpush.bf16.msra.mxu1 %v3267_v50  ;;  %v3291_v50 = vld [vmem:[%s4035_s1 + $0x1c8] sm:$0xff] }
  0x5c   :  { %940 = vmatpush.bf16.msra.mxu2 %v3259_v60  ;;  %v3319_v60 = vld [vmem:[%s4035_s1 + $0x1e8] sm:$0xff] }
  0x5d   :  { %1021 = vmatpush.bf16.msra.mxu3 %v3275_v61  ;;  %v3298_v61 = vld [vmem:[%s4035_s1 + $0x200] sm:$0xff] }
  0x5e   :  { %769 = vmatpush.bf16.msra.mxu0 %v3250_v36  ;;  %v3288_v36 = vld [vmem:[%s4035_s1 + $0x1b0] sm:$0xff] }
  0x5f   :  { %879 = vmatpush.bf16.msra.mxu1 %v3266_v58  ;;  %v3313_v58 = vld [vmem:[%s4035_s1 + $0x1b8] sm:$0xff] }
  0x60   :  { %941 = vmatpush.bf16.msra.mxu2 %v3258_v0  ;;  %v3318_v0 = vld [vmem:[%s4035_s1 + $0x1e0] sm:$0xff] }
  0x61   :  { %1022 = vmatpush.bf16.msra.mxu3 %v3274_v1  ;;  %v3311_v1 = vld [vmem:[%s4035_s1 + $0x1a8] sm:$0xff] }
  0x62   :  { %1127 = vmatpush.bf16.msrb.mxu0 %v3297_v4 }
  0x63   :  { %1189 = vmatpush.bf16.msrb.mxu1 %v3289_v5  ;;  %v3310_v5 = vld [vmem:[%s4035_s1 + $0x1a0] sm:$0xff] }
  0x66   :  { %1128 = vmatpush.bf16.msrb.mxu0 %v3296_v35  ;;  %v3345_v35 = vld [vmem:[%s4035_s1 + $0x2b8] sm:$0xff] }
  0x67   :  { %1190 = vmatpush.bf16.msrb.mxu1 %v3288_v36  ;;  %v3337_v36 = vld [vmem:[%s4035_s1 + $0x278] sm:$0xff] }
  0x6a   :  { %1129 = vmatpush.bf16.msrb.mxu0 %v3295_v38 }
  0x6b   :  { %1191 = vmatpush.bf16.msrb.mxu1 %v3287_v39 }
  0x6e   :  { %1130 = vmatpush.bf16.msrb.mxu0 %v3294_v41 }
  0x72   :  { %1131 = vmatpush.bf16.msrb.mxu0 %v3293_v44 }
  0x9e   :  { %v126_v42 = vpop.f32.mrf.mxu0 }
  0x9f   :  { %v188_v43 = vpop.f32.mrf.mxu1 }
  0xa0   :  { %v189_v47 = vadd.f32 %v188_v43, %v126_v42  ;;  %v3286_v42 = vld [vmem:[%s4035_s1 + $0x1a0] sm:$0xff]  ;;  %v3303_v43 = vld [vmem:[%s4035_s1 + $0x228] sm:$0xff] }
  0xa1   :  { %1192 = vmatpush.bf16.msrb.mxu1 %v3286_v42 }
  0xa5   :  { %1193 = vmatpush.bf16.msrb.mxu1 %v3285_v45 }
  0xa6   :  { %v270_v51 = vpop.f32.mrf.mxu2  ;;  %v128_v53 = vpop.f32.mrf.mxu0 }
  0xa7   :  { %v275_v52 = vadd.f32 %v270_v51, %v189_v47  ;;  %v190_v54 = vpop.f32.mrf.mxu1  ;;  %v376_v7 = vpop.f32.mrf.mxu3  ;;  %v3292_v47 = vld [vmem:[%s4035_s1 + $0x1d0] sm:$0xff]  ;;  %v3321_v51 = vld [vmem:[%s4035_s1 + $0x1f8] sm:$0xff] }
  0xa8   :  { %v191_v59 = vadd.f32 %v190_v54, %v128_v53  ;;  %1132 = vmatpush.bf16.msrb.mxu0 %v3292_v47  ;;  %v3300_v53 = vld [vmem:[%s4035_s1 + $0x210] sm:$0xff]  ;;  %v3290_v54 = vld [vmem:[%s4035_s1 + $0x1c0] sm:$0xff] }
  0xa9   :  { %v277_v55 = vmax.f32 %v275_v52, 0.0  ;;  %1194 = vmatpush.bf16.msrb.mxu1 %v3284_v48  ;;  %v3283_v52 = vld [vmem:[%s4035_s1 + $0x188] sm:$0xff] }
  0xab   :  { %279 = vst [vmem:[#allocation3 + $0x1] sm:$0xff] %v277_v55 }
  0xac   :  { %1133 = vmatpush.bf16.msrb.mxu0 %v3291_v50 }
  0xad   :  { %1195 = vmatpush.bf16.msrb.mxu1 %v3283_v52 }
  0xae   :  { %v272_v62 = vpop.f32.mrf.mxu2 }
  0xaf   :  { %v276_v63 = vadd.f32 %v272_v62, %v191_v59  ;;  %v378_v21 = vpop.f32.mrf.mxu3  ;;  %v3329_v59 = vld [vmem:[%s4035_s1 + $0x238] sm:$0xff]  ;;  %v3312_v62 = vld [vmem:[%s4035_s1 + $0x1b0] sm:$0xff] }
  0xb0   :  { %1134 = vmatpush.bf16.msrb.mxu0 %v3290_v54 }
  0xb1   :  { %v278_v2 = vmax.f32 %v276_v63, 0.0  ;;  %1196 = vmatpush.bf16.msrb.mxu1 %v3282_v56  ;;  %v3328_v63 = vld [vmem:[%s4035_s1 + $0x230] sm:$0xff] }
  0xb2   :  { %v530_v6 = vld [vmem:[#allocation3] sm:$0xff] }
  0xb3   :  { %280 = vst [vmem:[#allocation3 + $0x9] sm:$0xff] %v278_v2  ;;  %v552_v3 = vpack.c.bf16 %v278_v2, %v277_v55  ;;  %v3320_v55 = vld [vmem:[%s4035_s1 + $0x1f0] sm:$0xff]  ;;  %v3327_v2 = vld [vmem:[%s4035_s1 + $0x228] sm:$0xff] }
  0xb5   :  { %626 = vmatmul.bf16.vlgmr.msrb.gmra.mxu2 %v552_v3  ;;  %v3317_v3 = vld [vmem:[%s4035_s1 + $0x1d8] sm:$0xff] }
  0xb6   :  { %1271 = vmatpush.bf16.msrb.mxu2 %v3305_v37 }
  0xba   :  { %v531_v8 = vld [vmem:[#allocation3 + $0x8] sm:$0xff]  ;;  %1272 = vmatpush.bf16.msrb.mxu2 %v3304_v40 }
  0xbb   :  { %v694_v9 = vld [vmem:[#allocation3 + $0x2] sm:$0xff]  ;;  %v695_v10 = vld [vmem:[#allocation3 + $0xa] sm:$0xff]  ;;  %v532_v11 = vpack.c.bf16 %v531_v8, %v530_v6 }
  0xbc   :  { %v696_v12 = vpack.c.bf16 %v695_v10, %v694_v9  ;;  %v3326_v6 = vld [vmem:[%s4035_s1 + $0x220] sm:$0xff] }
  0xbd   :  { %688 = vmatmul.bf16.vlgmr.msrb.gmra.mxu3 %v532_v11 }
  0xbe   :  { %v438_v13 = vpop.f32.mrf.mxu0  ;;  %770 = vmatmul.bf16.vlgmr.msra.gmra.mxu0 %v696_v12  ;;  %1273 = vmatpush.bf16.msrb.mxu2 %v3303_v43  ;;  %v3309_v12 = vld [vmem:[%s4035_s1 + $0x198] sm:$0xff] }
  0xbf   :  { %v439_v16 = vadd.f32 %v438_v13, %v376_v7  ;;  %v519_v17 = vpop.f32.mrf.mxu1  ;;  %1377 = vmatpush.bf16.msrb.mxu3 %v3321_v51  ;;  %1439 = vmatpush.bf16.msra.mxu0 %v3313_v58  ;;  %v3316_v7 = vld [vmem:[%s4035_s1 + $0x1d0] sm:$0xff]  ;;  %v3325_v13 = vld [vmem:[%s4035_s1 + $0x218] sm:$0xff] }
  0xc1   :  { %v524_v18 = vadd.f32 %v519_v17, %v439_v16  ;;  %v3315_v16 = vld [vmem:[%s4035_s1 + $0x1c8] sm:$0xff] }
  0xc2   :  { %1274 = vmatpush.bf16.msrb.mxu2 %v3302_v46 }
  0xc3   :  { %v526_v19 = vmax.f32 %v524_v18, 0.0  ;;  %1378 = vmatpush.bf16.msrb.mxu3 %v3320_v55  ;;  %1440 = vmatpush.bf16.msra.mxu0 %v3312_v62 }
  0xc5   :  { %528 = vst [vmem:[#allocation3 + $0x19] sm:$0xff] %v526_v19 }
  0xc6   :  { %v440_v22 = vpop.f32.mrf.mxu0  ;;  %1275 = vmatpush.bf16.msrb.mxu2 %v3301_v49 }
  0xc7   :  { %v441_v24 = vadd.f32 %v440_v22, %v378_v21  ;;  %v521_v25 = vpop.f32.mrf.mxu1  ;;  %1379 = vmatpush.bf16.msrb.mxu3 %v3319_v60  ;;  %1441 = vmatpush.bf16.msra.mxu0 %v3311_v1  ;;  %v3324_v21 = vld [vmem:[%s4035_s1 + $0x210] sm:$0xff]  ;;  %v3314_v22 = vld [vmem:[%s4035_s1 + $0x1c0] sm:$0xff]  ;;  %v3335_v1 = vld [vmem:[%s4035_s1 + $0x268] sm:$0xff] }
  0xc9   :  { %v525_v26 = vadd.f32 %v521_v25, %v441_v24 }
  0xca   :  { %1276 = vmatpush.bf16.msrb.mxu2 %v3300_v53 }
  0xcb   :  { %v527_v27 = vmax.f32 %v525_v26, 0.0  ;;  %1380 = vmatpush.bf16.msrb.mxu3 %v3318_v0  ;;  %1442 = vmatpush.bf16.msra.mxu0 %v3310_v5  ;;  %v3343_v0 = vld [vmem:[%s4035_s1 + $0x2a8] sm:$0xff] }
  0xcc   :  { %v786_v29 = vld [vmem:[#allocation3 + $0x18] sm:$0xff] }
  0xcd   :  { %529 = vst [vmem:[#allocation3 + $0x21] sm:$0xff] %v527_v27  ;;  %v807_v28 = vpack.c.bf16 %v527_v27, %v526_v19  ;;  %v3308_v19 = vld [vmem:[%s4035_s1 + $0x190] sm:$0xff]  ;;  %v3323_v27 = vld [vmem:[%s4035_s1 + $0x208] sm:$0xff] }
  0xce   :  { %1277 = vmatpush.bf16.msrb.mxu2 %v3299_v57  ;;  %v3351_v5 = vld [vmem:[%s4035_s1 + $0x2e8] sm:$0xff] }
  0xcf   :  { %880 = vmatmul.bf16.vlgmr.msra.gmra.mxu1 %v807_v28  ;;  %1381 = vmatpush.bf16.msrb.mxu3 %v3317_v3  ;;  %v3342_v3 = vld [vmem:[%s4035_s1 + $0x2a0] sm:$0xff] }
  0xd0   :  { %1520 = vmatpush.bf16.msra.mxu1 %v3329_v59  ;;  %1443 = vmatpush.bf16.msra.mxu0 %v3309_v12  ;;  %v3349_v12 = vld [vmem:[%s4035_s1 + $0x2d8] sm:$0xff] }
  0xd2   :  { %1278 = vmatpush.bf16.msrb.mxu2 %v3298_v61 }
  0xd3   :  { %1382 = vmatpush.bf16.msrb.mxu3 %v3316_v7  ;;  %v3333_v7 = vld [vmem:[%s4035_s1 + $0x258] sm:$0xff] }
  0xd4   :  { %v787_v30 = vld [vmem:[#allocation3 + $0x20] sm:$0xff]  ;;  %1521 = vmatpush.bf16.msra.mxu1 %v3328_v63  ;;  %1444 = vmatpush.bf16.msra.mxu0 %v3308_v19 }
  0xd5   :  { %v948_v31 = vld [vmem:[#allocation3 + $0x1a] sm:$0xff]  ;;  %v949_v32 = vld [vmem:[#allocation3 + $0x22] sm:$0xff]  ;;  %v788_v33 = vpack.c.bf16 %v787_v30, %v786_v29 }
  0xd6   :  { %v950_v34 = vpack.c.bf16 %v949_v32, %v948_v31  ;;  %v3306_v31 = vld [vmem:[%s4035_s1 + $0x180] sm:$0xff]  ;;  %v3344_v63 = vld [vmem:[%s4035_s1 + $0x2b0] sm:$0xff] }
  0xd7   :  { %942 = vmatmul.bf16.vlgmr.msra.gmra.mxu2 %v788_v33  ;;  %1383 = vmatpush.bf16.msrb.mxu3 %v3315_v16  ;;  %v3322_v32 = vld [vmem:[%s4035_s1 + $0x200] sm:$0xff]  ;;  %v3331_v16 = vld [vmem:[%s4035_s1 + $0x248] sm:$0xff]  ;;  %v3348_v19 = vld [vmem:[%s4035_s1 + $0x2d0] sm:$0xff] }
  0xd8   :  { %1023 = vmatmul.bf16.vlgmr.msra.gmra.mxu3 %v950_v34  ;;  %1522 = vmatpush.bf16.msra.mxu1 %v3327_v2  ;;  %v3352_v2 = vld [vmem:[%s4035_s1 + $0x2f0] sm:$0xff] }
  0xd9   :  { %1628 = vmatpush.bf16.msra.mxu2 %v3345_v35  ;;  %v3358_v35 = vld [vmem:[%s4035_s1 + $0x260] sm:$0xff] }
  0xdb   :  { %1384 = vmatpush.bf16.msrb.mxu3 %v3314_v22  ;;  %v3330_v22 = vld [vmem:[%s4035_s1 + $0x240] sm:$0xff] }
  0xdc   :  { %1523 = vmatpush.bf16.msra.mxu1 %v3326_v6  ;;  %v3341_v6 = vld [vmem:[%s4035_s1 + $0x298] sm:$0xff] }
  0xdd   :  { %1629 = vmatpush.bf16.msra.mxu2 %v3344_v63 }
  0xdf   :  { %1690 = vmatpush.bf16.msra.mxu3 %v3337_v36  ;;  %v3374_v36 = vld [vmem:[%s4035_s1 + $0x2e0] sm:$0xff] }
  0xe0   :  { %1524 = vmatpush.bf16.msra.mxu1 %v3325_v13  ;;  %v3339_v13 = vld [vmem:[%s4035_s1 + $0x288] sm:$0xff] }
  0xe1   :  { %1630 = vmatpush.bf16.msra.mxu2 %v3343_v0 }
  0xe4   :  { %1525 = vmatpush.bf16.msra.mxu1 %v3324_v21  ;;  %v3338_v21 = vld [vmem:[%s4035_s1 + $0x280] sm:$0xff] }
  0xe5   :  { %1631 = vmatpush.bf16.msra.mxu2 %v3342_v3 }
  0xe8   :  { %1526 = vmatpush.bf16.msra.mxu1 %v3323_v27  ;;  %v3360_v27 = vld [vmem:[%s4035_s1 + $0x270] sm:$0xff] }
  0xe9   :  { %1632 = vmatpush.bf16.msra.mxu2 %v3341_v6 }
  0xec   :  { %1527 = vmatpush.bf16.msra.mxu1 %v3322_v32  ;;  %v3375_v32 = vld [vmem:[%s4035_s1 + $0x2e8] sm:$0xff] }
 0x138   :  { %v627_v4 = vpop.f32.mrf.mxu2 }
 0x13b   :  { %v771_v8 = vpop.f32.mrf.mxu0 }
 0x140   :  { %v689_v9 = vpop.f32.mrf.mxu3  ;;  %v629_v24 = vpop.f32.mrf.mxu2 }
 0x141   :  { %v690_v10 = vadd.f32 %v689_v9, %v627_v4  ;;  %v3334_v4 = vld [vmem:[%s4035_s1 + $0x260] sm:$0xff]  ;;  %v3340_v9 = vld [vmem:[%s4035_s1 + $0x290] sm:$0xff] }
 0x142   :  { %1633 = vmatpush.bf16.msra.mxu2 %v3340_v9 }
 0x143   :  { %v776_v11 = vadd.f32 %v771_v8, %v690_v10  ;;  %v773_v28 = vpop.f32.mrf.mxu0  ;;  %v3350_v8 = vld [vmem:[%s4035_s1 + $0x2e0] sm:$0xff]  ;;  %v3332_v10 = vld [vmem:[%s4035_s1 + $0x250] sm:$0xff] }
 0x145   :  { %v778_v17 = vmax.f32 %v776_v11, 0.0  ;;  %v3369_v11 = vld [vmem:[%s4035_s1 + $0x2b8] sm:$0xff] }
 0x146   :  { %1634 = vmatpush.bf16.msra.mxu2 %v3339_v13 }
 0x147   :  { %v3835_v18 = vadd.f32 %v778_v17, %v3437_v14  ;;  %v3307_v14 = vld [vmem:[%s4035_s1 + $0x188] sm:$0xff]  ;;  %v3368_v17 = vld [vmem:[%s4035_s1 + $0x2b0] sm:$0xff] }
 0x148   :  { %v691_v25 = vpop.f32.mrf.mxu3  ;;  %1445 = vmatpush.bf16.msra.mxu0 %v3307_v14  ;;  %v3347_v14 = vld [vmem:[%s4035_s1 + $0x2c8] sm:$0xff] }
 0x149   :  { %784 = vst [vmem:[#allocation2 + $0x1] sm:$0xff] %v3835_v18  ;;  %v692_v26 = vadd.f32 %v691_v25, %v629_v24  ;;  %v3361_v24 = vld [vmem:[%s4035_s1 + $0x278] sm:$0xff] }
 0x14a   :  { %v3377_v25 = vld [vmem:[%s4035_s1 + $0x2f8] sm:$0xff]  ;;  %1635 = vmatpush.bf16.msra.mxu2 %v3338_v21 }
 0x14b   :  { %v777_v29 = vadd.f32 %v773_v28, %v692_v26  ;;  %v3367_v26 = vld [vmem:[%s4035_s1 + $0x2a8] sm:$0xff]  ;;  %v3376_v28 = vld [vmem:[%s4035_s1 + $0x2f0] sm:$0xff] }
 0x14c   :  { %1446 = vmatpush.bf16.msra.mxu0 %v3306_v31  ;;  %v881_v37 = vpop.f32.mrf.mxu1  ;;  %v3359_v31 = vld [vmem:[%s4035_s1 + $0x268] sm:$0xff] }
 0x14d   :  { %v779_v30 = vmax.f32 %v777_v29, 0.0  ;;  %v3366_v29 = vld [vmem:[%s4035_s1 + $0x2a0] sm:$0xff] }
 0x14f   :  { %v3860_v33 = vadd.f32 %v779_v30, %v3442_v15  ;;  %v3353_v15 = vld [vmem:[%s4035_s1 + $0x2f8] sm:$0xff]  ;;  %v3346_v30 = vld [vmem:[%s4035_s1 + $0x2c0] sm:$0xff] }
 0x150   :  { %v1039_v38 = vld [vmem:[#allocation2] sm:$0xff] }
 0x151   :  { %785 = vst [vmem:[#allocation2 + $0x9] sm:$0xff] %v3860_v33  ;;  %v1061_v34 = vpack.c.bf16 %v3860_v33, %v3835_v18 }
 0x153   :  { %1135 = vmatmul.bf16.vlgmr.msrb.gmra.mxu0 %v1061_v34  ;;  %v3365_v34 = vld [vmem:[%s4035_s1 + $0x298] sm:$0xff] }
 0x154   :  { %1772 = vmatpush.bf16.msrb.mxu0 %v3353_v15  ;;  %v883_v50 = vpop.f32.mrf.mxu1  ;;  %v3364_v15 = vld [vmem:[%s4035_s1 + $0x290] sm:$0xff] }
 0x158   :  { %v1040_v41 = vld [vmem:[#allocation2 + $0x8] sm:$0xff]  ;;  %1773 = vmatpush.bf16.msrb.mxu0 %v3352_v2 }
 0x159   :  { %v1203_v42 = vld [vmem:[#allocation2 + $0x2] sm:$0xff]  ;;  %v1204_v43 = vld [vmem:[#allocation2 + $0xa] sm:$0xff]  ;;  %v1041_v45 = vpack.c.bf16 %v1040_v41, %v1039_v38  ;;  %v3357_v38 = vld [vmem:[%s4035_s1 + $0x258] sm:$0xff] }
 0x15a   :  { %v943_v39 = vpop.f32.mrf.mxu2  ;;  %v1205_v46 = vpack.c.bf16 %v1204_v43, %v1203_v42  ;;  %v3356_v43 = vld [vmem:[%s4035_s1 + $0x250] sm:$0xff] }
 0x15b   :  { %v1024_v40 = vpop.f32.mrf.mxu3  ;;  %v944_v44 = vadd.f32 %v943_v39, %v881_v37  ;;  %1197 = vmatmul.bf16.vlgmr.msrb.gmra.mxu1 %v1041_v45  ;;  %v3373_v39 = vld [vmem:[%s4035_s1 + $0x2d8] sm:$0xff]  ;;  %v3362_v45 = vld [vmem:[%s4035_s1 + $0x280] sm:$0xff] }
 0x15c   :  { %1279 = vmatmul.bf16.vlgmr.msrb.gmra.mxu2 %v1205_v46  ;;  %1774 = vmatpush.bf16.msrb.mxu0 %v3351_v5 }
 0x15d   :  { %v1029_v47 = vadd.f32 %v1024_v40, %v944_v44  ;;  %1882 = vmatpush.bf16.msrb.mxu1 %v3369_v11  ;;  %1944 = vmatpush.bf16.msrb.mxu2 %v3361_v24  ;;  %v3363_v40 = vld [vmem:[%s4035_s1 + $0x288] sm:$0xff]  ;;  %v3372_v44 = vld [vmem:[%s4035_s1 + $0x2d0] sm:$0xff] }
 0x15f   :  { %v1031_v48 = vmax.f32 %v1029_v47, 0.0 }
 0x160   :  { %1775 = vmatpush.bf16.msrb.mxu0 %v3350_v8 }
 0x161   :  { %v3875_v49 = vadd.f32 %v3461_v20, %v1031_v48  ;;  %1883 = vmatpush.bf16.msrb.mxu1 %v3368_v17  ;;  %1945 = vmatpush.bf16.msrb.mxu2 %v3360_v27  ;;  %v3355_v48 = vld [vmem:[%s4035_s1 + $0x248] sm:$0xff] }
 0x162   :  { %v945_v51 = vpop.f32.mrf.mxu2 }
 0x163   :  { %1037 = vst [vmem:[#allocation2 + $0x19] sm:$0xff] %v3875_v49  ;;  %v946_v52 = vadd.f32 %v945_v51, %v883_v50  ;;  %v1026_v53 = vpop.f32.mrf.mxu3  ;;  %v3371_v50 = vld [vmem:[%s4035_s1 + $0x2c8] sm:$0xff] }
 0x164   :  { %1776 = vmatpush.bf16.msrb.mxu0 %v3349_v12 }
 0x165   :  { %v1030_v54 = vadd.f32 %v1026_v53, %v946_v52  ;;  %1884 = vmatpush.bf16.msrb.mxu1 %v3367_v26  ;;  %1946 = vmatpush.bf16.msrb.mxu2 %v3359_v31  ;;  %v3354_v53 = vld [vmem:[%s4035_s1 + $0x240] sm:$0xff] }
 0x167   :  { %v1032_v55 = vmax.f32 %v1030_v54, 0.0 }
 0x168   :  { %1777 = vmatpush.bf16.msrb.mxu0 %v3348_v19 }
 0x169   :  { %v3879_v56 = vadd.f32 %v3472_v23, %v1032_v55  ;;  %v3336_v23 = vld [vmem:[%s4035_s1 + $0x270] sm:$0xff]  ;;  %1885 = vmatpush.bf16.msrb.mxu1 %v3366_v29  ;;  %1947 = vmatpush.bf16.msrb.mxu2 %v3358_v35  ;;  %v3370_v55 = vld [vmem:[%s4035_s1 + $0x2c0] sm:$0xff] }
 0x16a   :  { %v1291_v58 = vld [vmem:[#allocation2 + $0x18] sm:$0xff]  ;;  %1691 = vmatpush.bf16.msra.mxu3 %v3336_v23 }
 0x16b   :  { %1038 = vst [vmem:[#allocation2 + $0x21] sm:$0xff] %v3879_v56  ;;  %v1312_v57 = vpack.c.bf16 %v3879_v56, %v3875_v49 }
 0x16c   :  { %1778 = vmatpush.bf16.msrb.mxu0 %v3347_v14 }
 0x16d   :  { %1385 = vmatmul.bf16.vlgmr.msrb.gmra.mxu3 %v1312_v57  ;;  %1886 = vmatpush.bf16.msrb.mxu1 %v3365_v34 }
 0x16e   :  { %1692 = vmatpush.bf16.msra.mxu3 %v3335_v1  ;;  %1948 = vmatpush.bf16.msrb.mxu2 %v3357_v38 }
 0x170   :  { %1779 = vmatpush.bf16.msrb.mxu0 %v3346_v30 }
 0x171   :  { %1887 = vmatpush.bf16.msrb.mxu1 %v3364_v15 }
 0x172   :  { %v1292_v20 = vld [vmem:[#allocation2 + $0x20] sm:$0xff]  ;;  %1693 = vmatpush.bf16.msra.mxu3 %v3334_v4  ;;  %1949 = vmatpush.bf16.msrb.mxu2 %v3356_v43 }
 0x173   :  { %v1453_v59 = vld [vmem:[#allocation2 + $0x1a] sm:$0xff]  ;;  %v1454_v60 = vld [vmem:[#allocation2 + $0x22] sm:$0xff]  ;;  %v1293_v61 = vpack.c.bf16 %v1292_v20, %v1291_v58 }
 0x174   :  { %v1455_v62 = vpack.c.bf16 %v1454_v60, %v1453_v59 }
 0x175   :  { %1447 = vmatmul.bf16.vlgmr.msra.gmra.mxu0 %v1293_v61  ;;  %1888 = vmatpush.bf16.msrb.mxu1 %v3363_v40 }
 0x176   :  { %1528 = vmatmul.bf16.vlgmr.msra.gmra.mxu1 %v1455_v62  ;;  %1694 = vmatpush.bf16.msra.mxu3 %v3333_v7 }
 0x177   :  { %1950 = vmatpush.bf16.msrb.mxu2 %v3355_v48 }
 0x179   :  { %1889 = vmatpush.bf16.msrb.mxu1 %v3362_v45 }
 0x17a   :  { %1695 = vmatpush.bf16.msra.mxu3 %v3332_v10 }
 0x17b   :  { %1951 = vmatpush.bf16.msrb.mxu2 %v3354_v53 }
 0x17e   :  { %1696 = vmatpush.bf16.msra.mxu3 %v3331_v16 }
 0x182   :  { %1697 = vmatpush.bf16.msra.mxu3 %v3330_v22 }
 0x186   :  { %2025 = vmatpush.bf16.msrb.mxu3 %v3377_v25 }
 0x18a   :  { %2026 = vmatpush.bf16.msrb.mxu3 %v3376_v28 }
 0x18e   :  { %2027 = vmatpush.bf16.msrb.mxu3 %v3375_v32 }
 0x192   :  { %2028 = vmatpush.bf16.msrb.mxu3 %v3374_v36 }
 0x196   :  { %2029 = vmatpush.bf16.msrb.mxu3 %v3373_v39 }
 0x19a   :  { %2030 = vmatpush.bf16.msrb.mxu3 %v3372_v44 }
 0x19e   :  { %2031 = vmatpush.bf16.msrb.mxu3 %v3371_v50 }
 0x1a2   :  { %2032 = vmatpush.bf16.msrb.mxu3 %v3370_v55 }
 0x1d0   :  { %v1136_v41 = vpop.f32.mrf.mxu0 }
 0x1d8   :  { %v1198_v37 = vpop.f32.mrf.mxu1  ;;  %v1138_v54 = vpop.f32.mrf.mxu0 }
 0x1d9   :  { %v1199_v42 = vadd.f32 %v1198_v37, %v1136_v41 }
 0x1df   :  { %v1280_v46 = vpop.f32.mrf.mxu2 }
 0x1e0   :  { %v1285_v47 = vadd.f32 %v1280_v46, %v1199_v42  ;;  %v1200_v52 = vpop.f32.mrf.mxu1 }
 0x1e1   :  { %v1201_v57 = vadd.f32 %v1200_v52, %v1138_v54 }
 0x1e2   :  { %v1287_v51 = vmax.f32 %v1285_v47, 0.0 }
 0x1e4   :  { %1289 = vst [vmem:[#allocation3 + $0x1] sm:$0xff] %v1287_v51 }
 0x1e7   :  { %v1282_v58 = vpop.f32.mrf.mxu2 }
 0x1e8   :  { %v1286_v20 = vadd.f32 %v1282_v58, %v1201_v57 }
 0x1ea   :  { %v1288_v59 = vmax.f32 %v1286_v20, 0.0 }
 0x1eb   :  { %v1540_v23 = vld [vmem:[#allocation3] sm:$0xff] }
 0x1ec   :  { %1290 = vst [vmem:[#allocation3 + $0x9] sm:$0xff] %v1288_v59  ;;  %v1562_v60 = vpack.c.bf16 %v1288_v59, %v1287_v51 }
 0x1ee   :  { %1636 = vmatmul.bf16.vlgmr.msra.gmra.mxu2 %v1562_v60 }
 0x1f0   :  { %v1386_v61 = vpop.f32.mrf.mxu3 }
 0x1f2   :  { %v1448_v62 = vpop.f32.mrf.mxu0 }
 0x1f3   :  { %v1529_v63 = vpop.f32.mrf.mxu1  ;;  %v1449_v0 = vadd.f32 %v1448_v62, %v1386_v61  ;;  %v1541_v1 = vld [vmem:[#allocation3 + $0x8] sm:$0xff] }
 0x1f4   :  { %v1704_v2 = vld [vmem:[#allocation3 + $0x2] sm:$0xff]  ;;  %v1705_v3 = vld [vmem:[#allocation3 + $0xa] sm:$0xff]  ;;  %v1542_v4 = vpack.c.bf16 %v1541_v1, %v1540_v23 }
 0x1f5   :  { %v1706_v5 = vpack.c.bf16 %v1705_v3, %v1704_v2  ;;  %v1534_v6 = vadd.f32 %v1529_v63, %v1449_v0 }
 0x1f6   :  { %1698 = vmatmul.bf16.vlgmr.msra.gmra.mxu3 %v1542_v4 }
 0x1f7   :  { %1780 = vmatmul.bf16.vlgmr.msrb.gmra.mxu0 %v1706_v5  ;;  %v1536_v7 = vmax.f32 %v1534_v6, 0.0 }
 0x1f8   :  { %v1388_v9 = vpop.f32.mrf.mxu3 }
 0x1f9   :  { %1538 = vst [vmem:[#allocation3 + $0x19] sm:$0xff] %v1536_v7 }
 0x1fa   :  { %v1450_v8 = vpop.f32.mrf.mxu0 }
 0x1fb   :  { %v1451_v10 = vadd.f32 %v1450_v8, %v1388_v9  ;;  %v1531_v11 = vpop.f32.mrf.mxu1 }
 0x1fd   :  { %v1535_v12 = vadd.f32 %v1531_v11, %v1451_v10 }
 0x1ff   :  { %v1537_v13 = vmax.f32 %v1535_v12, 0.0 }
 0x200   :  { %v1796_v17 = vld [vmem:[#allocation3 + $0x18] sm:$0xff] }
 0x201   :  { %1539 = vst [vmem:[#allocation3 + $0x21] sm:$0xff] %v1537_v13  ;;  %v1817_v16 = vpack.c.bf16 %v1537_v13, %v1536_v7 }
 0x203   :  { %1890 = vmatmul.bf16.vlgmr.msrb.gmra.mxu1 %v1817_v16 }
 0x208   :  { %v1797_v19 = vld [vmem:[#allocation3 + $0x20] sm:$0xff] }
 0x209   :  { %v1958_v21 = vld [vmem:[#allocation3 + $0x1a] sm:$0xff]  ;;  %v1959_v22 = vld [vmem:[#allocation3 + $0x22] sm:$0xff]  ;;  %v1798_v24 = vpack.c.bf16 %v1797_v19, %v1796_v17 }
 0x20a   :  { %v1960_v25 = vpack.c.bf16 %v1959_v22, %v1958_v21 }
 0x20b   :  { %1952 = vmatmul.bf16.vlgmr.msrb.gmra.mxu2 %v1798_v24 }
 0x20c   :  { %2033 = vmatmul.bf16.vlgmr.msrb.gmra.mxu3 %v1960_v25 }
 0x271   :  { %v1637_v26 = vpop.f32.mrf.mxu2 }
 0x274   :  { %v1781_v14 = vpop.f32.mrf.mxu0 }
 0x279   :  { %v1699_v27 = vpop.f32.mrf.mxu3  ;;  %v1639_v32 = vpop.f32.mrf.mxu2 }
 0x27a   :  { %v1700_v28 = vadd.f32 %v1699_v27, %v1637_v26 }
 0x27c   :  { %v1786_v29 = vadd.f32 %v1781_v14, %v1700_v28  ;;  %v1783_v36 = vpop.f32.mrf.mxu0 }
 0x27e   :  { %v1788_v30 = vmax.f32 %v1786_v29, 0.0 }
 0x280   :  { %v1792_v31 = vadd.f32 %v1788_v30, %v3835_v18  ;;  %v1891_v39 = vpop.f32.mrf.mxu1 }
 0x281   :  { %v1701_v34 = vpop.f32.mrf.mxu3 }
 0x282   :  { %1794 = vst [vmem:[#allocation2 + $0x1] sm:$0xff] %v1792_v31  ;;  %v1702_v35 = vadd.f32 %v1701_v34, %v1639_v32 }
 0x283   :  { %2051 = vst [vmem:[%s4037_s2] sm:$0xff] %v1792_v31 }
 0x284   :  { %v1787_v15 = vadd.f32 %v1783_v36, %v1702_v35 }
 0x286   :  { %v1789_v37 = vmax.f32 %v1787_v15, 0.0 }
 0x288   :  { %v1793_v38 = vadd.f32 %v1789_v37, %v3860_v33  ;;  %v1893_v45 = vpop.f32.mrf.mxu1 }
 0x28a   :  { %1795 = vst [vmem:[#allocation2 + $0x9] sm:$0xff] %v1793_v38 }
 0x28b   :  { %2052 = vst [vmem:[%s4037_s2 + $0x8] sm:$0xff] %v1793_v38 }
 0x28e   :  { %v1953_v18 = vpop.f32.mrf.mxu2 }
 0x28f   :  { %v2034_v40 = vpop.f32.mrf.mxu3  ;;  %v1954_v41 = vadd.f32 %v1953_v18, %v1891_v39 }
 0x291   :  { %v2039_v42 = vadd.f32 %v2034_v40, %v1954_v41 }
 0x293   :  { %v2041_v43 = vmax.f32 %v2039_v42, 0.0 }
 0x295   :  { %v2045_v44 = vadd.f32 %v2041_v43, %v3875_v49 }
 0x296   :  { %v1955_v46 = vpop.f32.mrf.mxu2 }
 0x297   :  { %2047 = vst [vmem:[#allocation2 + $0x19] sm:$0xff] %v2045_v44  ;;  %v1956_v47 = vadd.f32 %v1955_v46, %v1893_v45  ;;  %v2036_v33 = vpop.f32.mrf.mxu3 }
 0x298   :  { %3184 = vst [vmem:[%s4037_s2 + $0x10] sm:$0xff] %v2045_v44 }
 0x299   :  { %v2040_v48 = vadd.f32 %v2036_v33, %v1956_v47 }
 0x29b   :  { %v2042_v50 = vmax.f32 %v2040_v48, 0.0 }
 0x29d   :  { %v2046_v51 = vadd.f32 %v2042_v50, %v3879_v56 }
 0x29f   :  { %2048 = vst [vmem:[#allocation2 + $0x21] sm:$0xff] %v2046_v51 }
 0x2a0   :  { %3185 = vst [vmem:[%s4037_s2 + $0x18] sm:$0xff] %v2046_v51 }

</bundles_post_ra>
